<compile_context>
chip_gen: v7x
topology: tpu7x:2x2x1
jax: 0.10.0
libtpu: 0.0.40
codegen_flags: <defaults>
</compile_context>

<pallas_src>
import functools

import numpy as np
import jax
import jax.numpy as jnp
from jax.experimental import pallas as pl
from jax.experimental.pallas import tpu as pltpu

EPS = 1e-6
_LANE = 128


def _round_up(v, m):
    return ((v + m - 1) // m) * m


def _cdiv(a, b):
    return -(-a // b)


def _hist_kernel(x_ref, o_ref, acc_ref, *, sigma, h, lo, hi, method,
                 intensity_scale, n_valid, n_chunk, chunks_per_split,
                 needs_mask, symmetric, refine_reciprocal):
    # x_ref:   (3, n_chunk)  clamped RGB pixels (one chunk of one image)
    # o_ref:   (3, h, h)     UNNORMALIZED partial histogram for (image, split)
    # acc_ref: (3, h, h) f32 accumulator scratch (persists across chunks)
    s = pl.program_id(1)           # core-split index (parallel)
    kc = pl.program_id(2)          # chunk index within this split (reduction)

    @pl.when(kc == 0)
    def _():
        acc_ref[...] = jnp.zeros_like(acc_ref)

    x = x_ref[...]                                    # (3, nc) f32
    inv_sigma = 1.0 / sigma
    step = (hi - lo) / (h - 1)

    # Bin centers pre-scaled by 1/sigma as a tiny (h, 1) strip; broadcast
    # happens inside the kmap subtract (no full (h, nc) bins array).
    bin_i = jax.lax.broadcasted_iota(jnp.int32, (h, 1), 0).astype(jnp.float32)
    bins_s = (lo + step * bin_i) * inv_sigma          # (h, 1)

    # Validity mask for padded lanes: padded pixels must contribute 0 mass.
    valid = None
    if needs_mask:
        lane_idx = jax.lax.broadcasted_iota(jnp.int32, (1, n_chunk), 1)
        chunk_start = (s * chunks_per_split + kc) * n_chunk
        valid = (chunk_start + lane_idx) < n_valid

    if intensity_scale:
        II = x * x
        Iy = jnp.sqrt(II[0:1] + II[1:2] + II[2:3] + EPS)        # (1, nc)
        if valid is not None:
            Iy = jnp.where(valid, Iy, 0.0)
    elif valid is not None:
        Iy = valid.astype(jnp.float32)
    else:
        Iy = None                  # all-ones: skip the multiplies entirely

    logI = jnp.log(x + EPS)                           # (3, nc)
    l0, l1, l2 = logI[0:1], logI[1:2], logI[2:3]

    def kmap(u):
        # u: (1, nc) log-chromaticity difference; returns (h, nc) kernel map.
        t = u * inv_sigma - bins_s                    # broadcast -> (h, nc)
        if method == "RBF":
            return jnp.exp(-(t * t))                  # EUP exp
        # inverse-quadratic: 1/(1+t^2) via EUP approx reciprocal.
        d = 1.0 + t * t
        r = pl.reciprocal(d, approx=True)
        if refine_reciprocal:
            r = r * (2.0 - d * r)                     # one Newton step (~1e-7 rel)
        return r

    def scale(k):
        return k if Iy is None else Iy * k

    def mm_t(a, b):                                   # a @ b.T with f32 accum
        # TODO(synk): if the bundle dump shows an explicit vxpose of the RHS,
        # try pl.dot(a, b, trans_b=True) or an (nc, h)-layout RHS instead.
        return jax.lax.dot_general(a, b, (((1,), (1,)), ((), ())),
                                   preferred_element_type=jnp.float32)

    if symmetric:
        # Symmetric bins: k(-u - bin_i) == k(u - bin_{h-1-i}), so only 3 of
        # the 6 kernel maps are needed; flips are applied at finalize.
        k01 = kmap(l0 - l1)                           # log(r/g)
        k02 = kmap(l0 - l2)                           # log(r/b)
        k12 = kmap(l1 - l2)                           # log(g/b)
        a01 = scale(k01)
        a02 = scale(k02)
        acc_ref[0] += mm_t(a01, k02)                  # (h, h)
        # Two separate matmuls (no (2h, nc) concat copy through VMEM).
        acc_ref[1] += mm_t(a01, k12)   # rows to be flipped at finalize
        acc_ref[2] += mm_t(a02, k12)   # rows+cols to be flipped at finalize
    else:
        def pair(lc, la, lb):
            return mm_t(scale(kmap(lc - la)), kmap(lc - lb))
        acc_ref[0] += pair(l0, l1, l2)
        acc_ref[1] += pair(l1, l0, l2)
        acc_ref[2] += pair(l2, l0, l1)

    @pl.when(kc == pl.num_programs(2) - 1)
    def _():
        acc = acc_ref[...]
        if symmetric:
            row = jax.lax.broadcasted_iota(jnp.int32, (h, h), 0)
            col = jax.lax.broadcasted_iota(jnp.int32, (h, h), 1)
            J = (row + col == h - 1).astype(jnp.float32)   # anti-diagonal flip
            o_ref[0] = acc[0]
            o_ref[1] = jnp.dot(J, acc[1], preferred_element_type=jnp.float32)
            o_ref[2] = jnp.dot(
                jnp.dot(J, acc[2], preferred_element_type=jnp.float32), J,
                preferred_element_type=jnp.float32)
        else:
            o_ref[...] = acc


def rgb_uv_hist_block(x, *, h=64, insz=128, resizing="interpolation",
                      method="inverse-quadratic", sigma=0.02,
                      intensity_scale=True, hist_boundary=(-3.0, 3.0),
                      green_only=False, n_chunk=8192, core_split=None,
                      refine_reciprocal=True):
    """Pallas implementation of RGBuvHistBlock.forward."""
    if green_only:
        # TODO(synk): green_only=True (single log(g/r),log(g/b) channel) path not implemented.
        raise NotImplementedError("green_only=True not supported")
    if method not in ("inverse-quadratic", "RBF"):
        # TODO(synk): 'thresholding' (non-differentiable) method not implemented.
        raise NotImplementedError(f"method {method!r} not supported")

    lo, hi = sorted((float(hist_boundary[0]), float(hist_boundary[1])))

    x = jnp.clip(x.astype(jnp.float32), 0.0, 1.0)
    B, C, H, W = x.shape
    if H > insz or W > insz:
        if resizing == "interpolation":
            # TODO(synk): resize done in plain JAX; jax.image bilinear matches
            # F.interpolate(align_corners=False) up to resize-convention detail.
            x = jax.image.resize(x, (B, C, insz, insz), method="bilinear")
        elif resizing == "sampling":
            i1 = np.linspace(0, H, h, endpoint=False).astype(np.int32)
            i2 = np.linspace(0, W, h, endpoint=False).astype(np.int32)
            x = jnp.take(jnp.take(x, i1, axis=2), i2, axis=3)
        else:
            raise ValueError(f"wrong resizing method: {resizing}")
        B, C, H, W = x.shape
    if C > 3:
        x = x[:, :3, :, :]

    N = H * W
    x_flat = x.reshape(B, 3, N)

    # Pixel-axis tiling: chunk is a lane multiple. Default nc=8192 keeps the
    # ~7 live (h, nc) f32 intermediates ~14 MiB -> fits the 32 MiB scoped VMEM
    # on every generation (incl. v7x's 64 MiB physical). nc=16384 is only
    # advisable on v5e/v6e (128 MiB VMEM).
    nc = min(int(n_chunk), _round_up(N, _LANE))
    nc = _round_up(nc, _LANE)
    chunks_total = _cdiv(N, nc)

    # Split the pixel-chunk axis across a leading "parallel" grid dim so both
    # v7x TensorCores get work at small batch; partials summed in the wrapper.
    if core_split is None:
        core_split = 2 if (B == 1 and chunks_total >= 2) else 1
    core_split = max(1, min(int(core_split), chunks_total))
    chunks_per_split = _cdiv(chunks_total, core_split)

    n_pad = nc * chunks_per_split * core_split
    if n_pad != N:
        x_flat = jnp.pad(x_flat, ((0, 0), (0, 0), (0, n_pad - N)))

    symmetric = abs(lo + hi) < 1e-9

    kernel = functools.partial(
        _hist_kernel, sigma=float(sigma), h=int(h), lo=lo, hi=hi,
        method=method, intensity_scale=bool(intensity_scale),
        n_valid=N, n_chunk=nc, chunks_per_split=int(chunks_per_split),
        needs_mask=(n_pad != N), symmetric=symmetric,
        refine_reciprocal=bool(refine_reciprocal))

    # Scale the scoped-VMEM limit with the chunk size; cap at 64 MiB (v7x).
    vmem_limit = int(min(64 << 20, max(32 << 20, 12 * h * nc * 4)))

    cps = int(chunks_per_split)
    partial = pl.pallas_call(
        kernel,
        out_shape=jax.ShapeDtypeStruct((B, core_split, 3, h, h), jnp.float32),
        grid_spec=pltpu.PrefetchScalarGridSpec(
            num_scalar_prefetch=0,
            grid=(B, core_split, cps),                # reduction axis last
            in_specs=[
                pl.BlockSpec((None, 3, nc),
                             lambda b, s, k: (b, 0, s * cps + k)),
            ],
            out_specs=pl.BlockSpec((None, None, 3, h, h),
                                   lambda b, s, k: (b, s, 0, 0, 0)),
            scratch_shapes=[pltpu.VMEM((3, h, h), jnp.float32)],
        ),
        compiler_params=pltpu.CompilerParams(
            dimension_semantics=("parallel", "parallel", "arbitrary"),
            vmem_limit_bytes=vmem_limit),
    )(x_flat)

    # Sum split partials and normalize (tiny: (B, 3, h, h)).
    hists = jnp.sum(partial, axis=1)
    total = jnp.sum(hists, axis=(1, 2, 3), keepdims=True)
    return hists / (total + EPS)


def _reference_jax(x, *, h=64, insz=128, sigma=0.02,
                   hist_boundary=(-3.0, 3.0)):
    """Pure-JAX reference mirroring the PyTorch forward (default options)."""
    x = jnp.clip(x.astype(jnp.float32), 0.0, 1.0)
    B, C, H, W = x.shape
    if H > insz or W > insz:
        x = jax.image.resize(x, (B, C, insz, insz), method="bilinear")
    if x.shape[1] > 3:
        x = x[:, :3]
    B = x.shape[0]
    bins = jnp.linspace(hist_boundary[0], hist_boundary[1], h,
                        dtype=jnp.float32)
    hists = []
    for l in range(B):
        I = x[l].reshape(3, -1).T                      # (N, 3)
        II = I ** 2
        Iy = jnp.sqrt(II[:, 0] + II[:, 1] + II[:, 2] + EPS)[:, None]
        logI = jnp.log(I + EPS)
        chans = []
        for c, (a, b) in zip(range(3), [(1, 2), (0, 2), (0, 1)]):
            u = (logI[:, c] - logI[:, a])[:, None]
            v = (logI[:, c] - logI[:, b])[:, None]
            du = jnp.abs(u - bins[None, :])
            dv = jnp.abs(v - bins[None, :])
            ku = 1.0 / (1.0 + du ** 2 / sigma ** 2)
            kv = 1.0 / (1.0 + dv ** 2 / sigma ** 2)
            chans.append((Iy * ku).T @ kv)
        hists.append(jnp.stack(chans))
    hists = jnp.stack(hists)                           # (B, 3, h, h)
    norm = hists.sum(axis=(1, 2, 3)).reshape(-1, 1, 1, 1) + EPS
    return hists / norm


if __name__ == "__main__":
    key = jax.random.PRNGKey(0)

    # Small primary test: 4 channels -> forward slices to RGB.
    B, C, H, W = 2, 4, 16, 16
    x = jax.random.uniform(key, (B, C, H, W), dtype=jnp.float32)
    out = rgb_uv_hist_block(x, h=64, insz=128, sigma=0.02)
    out = jax.block_until_ready(out)
    ref = _reference_jax(x, h=64, sigma=0.02)
    assert out.shape == (B, 3, 64, 64)
    assert jnp.allclose(out, ref, atol=1e-5, rtol=1e-4), "mismatch vs reference"

    # Secondary test exercising lane padding + the 2-way core split (B=1).
    x2 = jax.random.uniform(jax.random.PRNGKey(1), (1, 3, 96, 96),
                            dtype=jnp.float32)
    out2 = jax.block_until_ready(rgb_uv_hist_block(x2, h=64, insz=128,
                                                   sigma=0.02))
    ref2 = _reference_jax(x2, h=64, sigma=0.02)
    assert out2.shape == (1, 3, 64, 64)
    assert jnp.allclose(out2, ref2, atol=1e-5, rtol=1e-4), "mismatch (split)"

    print("KERNEL_OK")
</pallas_src>

<mosaic_0001>
module attributes {stable_mosaic.version = 11 : i64} {
  func.func @_hist_kernel(%arg0: i32, %arg1: i32, %arg2: i32, %arg3: memref<1x3x256xf32, #tpu.memory_space<vmem>>, %arg4: memref<1x1x3x64x64xf32, #tpu.memory_space<vmem>>, %arg5: memref<3x64x64xf32, #tpu.memory_space<vmem>>) attributes {dimension_semantics = [#tpu.dimension_semantics<parallel>, #tpu.dimension_semantics<parallel>, #tpu.dimension_semantics<arbitrary>], iteration_bounds = array<i64: 2, 1, 1>, scalar_prefetch = 0 : i64, scratch_operands = 1 : i64, tpu.core_type = #tpu.core_type<tc>, window_params = [{transform_indices = @transform_0, window_bounds = array<i64: 1, 3, 256>}, {transform_indices = @transform_1, window_bounds = array<i64: 1, 1, 3, 64, 64>}]} {
    %c0_i32 = arith.constant 0 : i32
    %0 = arith.cmpi eq, %arg2, %c0_i32 : i32
    %1 = arith.extui %0 : i1 to i32
    %c0_i32_0 = arith.constant 0 : i32
    %2 = arith.cmpi ne, %1, %c0_i32_0 : i32
    scf.if %2 {
      %cst_37 = arith.constant 0.000000e+00 : f32
      %98 = vector.broadcast %cst_37 : f32 to vector<3x64x64xf32>
      %c0_38 = arith.constant 0 : index
      %c0_39 = arith.constant 0 : index
      %c0_40 = arith.constant 0 : index
      %99 = vector.load %arg5[%c0_38, %c0_39, %c0_40] : memref<3x64x64xf32, #tpu.memory_space<vmem>>, vector<3x64x64xf32>
      tpu.vector_store %arg5[%c0_38, %c0_39, %c0_40], %98 {strides = array<i32>} : memref<3x64x64xf32, #tpu.memory_space<vmem>>, vector<3x64x64xf32>,
    } else {
    }
    %c0 = arith.constant 0 : index
    %c0_1 = arith.constant 0 : index
    %c0_2 = arith.constant 0 : index
    %3 = vector.load %arg3[%c0, %c0_1, %c0_2] : memref<1x3x256xf32, #tpu.memory_space<vmem>>, vector<1x3x256xf32>
    %4 = vector.shape_cast %3 : vector<1x3x256xf32> to vector<3x256xf32>
    %5 = tpu.iota {dimensions = array<i32: 0>} : vector<64x1xi32>
    %6 = arith.sitofp %5 : vector<64x1xi32> to vector<64x1xf32>
    %cst = arith.constant 0.095238097 : f32
    %7 = vector.broadcast %cst : f32 to vector<64x1xf32>
    %8 = arith.mulf %7, %6 : vector<64x1xf32>
    %cst_3 = arith.constant -3.000000e+00 : f32
    %9 = vector.broadcast %cst_3 : f32 to vector<64x1xf32>
    %10 = arith.addf %9, %8 : vector<64x1xf32>
    %cst_4 = arith.constant 5.000000e+01 : f32
    %11 = vector.broadcast %cst_4 : f32 to vector<64x1xf32>
    %12 = arith.mulf %10, %11 : vector<64x1xf32>
    %13 = arith.mulf %4, %4 : vector<3x256xf32>
    %14 = vector.extract_strided_slice %13 {offsets = [0, 0], sizes = [1, 256], strides = [1, 1]} : vector<3x256xf32> to vector<1x256xf32>
    %15 = vector.extract_strided_slice %13 {offsets = [1, 0], sizes = [1, 256], strides = [1, 1]} : vector<3x256xf32> to vector<1x256xf32>
    %16 = arith.addf %14, %15 : vector<1x256xf32>
    %17 = vector.extract_strided_slice %13 {offsets = [2, 0], sizes = [1, 256], strides = [1, 1]} : vector<3x256xf32> to vector<1x256xf32>
    %18 = arith.addf %16, %17 : vector<1x256xf32>
    %cst_5 = arith.constant 9.99999997E-7 : f32
    %19 = vector.broadcast %cst_5 : f32 to vector<1x256xf32>
    %20 = arith.addf %18, %19 : vector<1x256xf32>
    %21 = math.sqrt %20 : vector<1x256xf32>
    %cst_6 = arith.constant 9.99999997E-7 : f32
    %22 = vector.broadcast %cst_6 : f32 to vector<3x256xf32>
    %23 = arith.addf %4, %22 : vector<3x256xf32>
    %24 = math.log %23 : vector<3x256xf32>
    %25 = vector.extract_strided_slice %24 {offsets = [0, 0], sizes = [1, 256], strides = [1, 1]} : vector<3x256xf32> to vector<1x256xf32>
    %26 = vector.extract_strided_slice %24 {offsets = [1, 0], sizes = [1, 256], strides = [1, 1]} : vector<3x256xf32> to vector<1x256xf32>
    %27 = vector.extract_strided_slice %24 {offsets = [2, 0], sizes = [1, 256], strides = [1, 1]} : vector<3x256xf32> to vector<1x256xf32>
    %28 = arith.subf %25, %26 : vector<1x256xf32>
    %cst_7 = arith.constant 5.000000e+01 : f32
    %29 = vector.broadcast %cst_7 : f32 to vector<1x256xf32>
    %30 = arith.mulf %28, %29 : vector<1x256xf32>
    %31 = vector.broadcast %30 : vector<1x256xf32> to vector<64x256xf32>
    %32 = vector.broadcast %12 : vector<64x1xf32> to vector<64x256xf32>
    %33 = arith.subf %31, %32 : vector<64x256xf32>
    %34 = arith.mulf %33, %33 : vector<64x256xf32>
    %cst_8 = arith.constant 1.000000e+00 : f32
    %35 = vector.broadcast %cst_8 : f32 to vector<64x256xf32>
    %36 = arith.addf %35, %34 : vector<64x256xf32>
    %37 = tpu.reciprocal %36 {approx = true} : vector<64x256xf32> -> vector<64x256xf32>
    %38 = arith.mulf %36, %37 : vector<64x256xf32>
    %cst_9 = arith.constant 2.000000e+00 : f32
    %39 = vector.broadcast %cst_9 : f32 to vector<64x256xf32>
    %40 = arith.subf %39, %38 : vector<64x256xf32>
    %41 = arith.mulf %37, %40 : vector<64x256xf32>
    %42 = arith.subf %25, %27 : vector<1x256xf32>
    %cst_10 = arith.constant 5.000000e+01 : f32
    %43 = vector.broadcast %cst_10 : f32 to vector<1x256xf32>
    %44 = arith.mulf %42, %43 : vector<1x256xf32>
    %45 = vector.broadcast %44 : vector<1x256xf32> to vector<64x256xf32>
    %46 = vector.broadcast %12 : vector<64x1xf32> to vector<64x256xf32>
    %47 = arith.subf %45, %46 : vector<64x256xf32>
    %48 = arith.mulf %47, %47 : vector<64x256xf32>
    %cst_11 = arith.constant 1.000000e+00 : f32
    %49 = vector.broadcast %cst_11 : f32 to vector<64x256xf32>
    %50 = arith.addf %49, %48 : vector<64x256xf32>
    %51 = tpu.reciprocal %50 {approx = true} : vector<64x256xf32> -> vector<64x256xf32>
    %52 = arith.mulf %50, %51 : vector<64x256xf32>
    %cst_12 = arith.constant 2.000000e+00 : f32
    %53 = vector.broadcast %cst_12 : f32 to vector<64x256xf32>
    %54 = arith.subf %53, %52 : vector<64x256xf32>
    %55 = arith.mulf %51, %54 : vector<64x256xf32>
    %56 = arith.subf %26, %27 : vector<1x256xf32>
    %cst_13 = arith.constant 5.000000e+01 : f32
    %57 = vector.broadcast %cst_13 : f32 to vector<1x256xf32>
    %58 = arith.mulf %56, %57 : vector<1x256xf32>
    %59 = vector.broadcast %58 : vector<1x256xf32> to vector<64x256xf32>
    %60 = vector.broadcast %12 : vector<64x1xf32> to vector<64x256xf32>
    %61 = arith.subf %59, %60 : vector<64x256xf32>
    %62 = arith.mulf %61, %61 : vector<64x256xf32>
    %cst_14 = arith.constant 1.000000e+00 : f32
    %63 = vector.broadcast %cst_14 : f32 to vector<64x256xf32>
    %64 = arith.addf %63, %62 : vector<64x256xf32>
    %65 = tpu.reciprocal %64 {approx = true} : vector<64x256xf32> -> vector<64x256xf32>
    %66 = arith.mulf %64, %65 : vector<64x256xf32>
    %cst_15 = arith.constant 2.000000e+00 : f32
    %67 = vector.broadcast %cst_15 : f32 to vector<64x256xf32>
    %68 = arith.subf %67, %66 : vector<64x256xf32>
    %69 = arith.mulf %65, %68 : vector<64x256xf32>
    %70 = vector.broadcast %21 : vector<1x256xf32> to vector<64x256xf32>
    %71 = arith.mulf %70, %41 : vector<64x256xf32>
    %72 = vector.broadcast %21 : vector<1x256xf32> to vector<64x256xf32>
    %73 = arith.mulf %72, %55 : vector<64x256xf32>
    %c0_16 = arith.constant 0 : index
    %c0_17 = arith.constant 0 : index
    %c0_18 = arith.constant 0 : index
    %74 = vector.load %arg5[%c0_16, %c0_17, %c0_18] : memref<3x64x64xf32, #tpu.memory_space<vmem>>, vector<1x64x64xf32>
    %75 = vector.shape_cast %74 : vector<1x64x64xf32> to vector<64x64xf32>
    %cst_19 = arith.constant dense<0.000000e+00> : vector<64x64xf32>
    %76 = tpu.matmul %71, %55, %cst_19 {dimension_numbers = #tpu.dot_dimension_numbers<[1], [1], [0], [0], [0, 0, 1, 0], [], []>} : vector<64x256xf32>, vector<64x256xf32>, vector<64x64xf32> -> vector<64x64xf32>
    %77 = arith.addf %75, %76 : vector<64x64xf32>
    %c0_20 = arith.constant 0 : index
    %c0_21 = arith.constant 0 : index
    %c0_22 = arith.constant 0 : index
    %78 = vector.load %arg5[%c0_20, %c0_21, %c0_22] : memref<3x64x64xf32, #tpu.memory_space<vmem>>, vector<1x64x64xf32>
    %79 = vector.shape_cast %78 : vector<1x64x64xf32> to vector<64x64xf32>
    %80 = vector.shape_cast %77 : vector<64x64xf32> to vector<1x64x64xf32>
    tpu.vector_store %arg5[%c0_20, %c0_21, %c0_22], %80 {strides = array<i32>} : memref<3x64x64xf32, #tpu.memory_space<vmem>>, vector<1x64x64xf32>,
    %c1 = arith.constant 1 : index
    %c0_23 = arith.constant 0 : index
    %c0_24 = arith.constant 0 : index
    %81 = vector.load %arg5[%c1, %c0_23, %c0_24] : memref<3x64x64xf32, #tpu.memory_space<vmem>>, vector<1x64x64xf32>
    %82 = vector.shape_cast %81 : vector<1x64x64xf32> to vector<64x64xf32>
    %cst_25 = arith.constant dense<0.000000e+00> : vector<64x64xf32>
    %83 = tpu.matmul %71, %69, %cst_25 {dimension_numbers = #tpu.dot_dimension_numbers<[1], [1], [0], [0], [0, 0, 1, 0], [], []>} : vector<64x256xf32>, vector<64x256xf32>, vector<64x64xf32> -> vector<64x64xf32>
    %84 = arith.addf %82, %83 : vector<64x64xf32>
    %c1_26 = arith.constant 1 : index
    %c0_27 = arith.constant 0 : index
    %c0_28 = arith.constant 0 : index
    %85 = vector.load %arg5[%c1_26, %c0_27, %c0_28] : memref<3x64x64xf32, #tpu.memory_space<vmem>>, vector<1x64x64xf32>
    %86 = vector.shape_cast %85 : vector<1x64x64xf32> to vector<64x64xf32>
    %87 = vector.shape_cast %84 : vector<64x64xf32> to vector<1x64x64xf32>
    tpu.vector_store %arg5[%c1_26, %c0_27, %c0_28], %87 {strides = array<i32>} : memref<3x64x64xf32, #tpu.memory_space<vmem>>, vector<1x64x64xf32>,
    %c2 = arith.constant 2 : index
    %c0_29 = arith.constant 0 : index
    %c0_30 = arith.constant 0 : index
    %88 = vector.load %arg5[%c2, %c0_29, %c0_30] : memref<3x64x64xf32, #tpu.memory_space<vmem>>, vector<1x64x64xf32>
    %89 = vector.shape_cast %88 : vector<1x64x64xf32> to vector<64x64xf32>
    %cst_31 = arith.constant dense<0.000000e+00> : vector<64x64xf32>
    %90 = tpu.matmul %73, %69, %cst_31 {dimension_numbers = #tpu.dot_dimension_numbers<[1], [1], [0], [0], [0, 0, 1, 0], [], []>} : vector<64x256xf32>, vector<64x256xf32>, vector<64x64xf32> -> vector<64x64xf32>
    %91 = arith.addf %89, %90 : vector<64x64xf32>
    %c2_32 = arith.constant 2 : index
    %c0_33 = arith.constant 0 : index
    %c0_34 = arith.constant 0 : index
    %92 = vector.load %arg5[%c2_32, %c0_33, %c0_34] : memref<3x64x64xf32, #tpu.memory_space<vmem>>, vector<1x64x64xf32>
    %93 = vector.shape_cast %92 : vector<1x64x64xf32> to vector<64x64xf32>
    %94 = vector.shape_cast %91 : vector<64x64xf32> to vector<1x64x64xf32>
    tpu.vector_store %arg5[%c2_32, %c0_33, %c0_34], %94 {strides = array<i32>} : memref<3x64x64xf32, #tpu.memory_space<vmem>>, vector<1x64x64xf32>,
    %c0_i32_35 = arith.constant 0 : i32
    %95 = arith.cmpi eq, %arg2, %c0_i32_35 : i32
    %96 = arith.extui %95 : i1 to i32
    %c0_i32_36 = arith.constant 0 : i32
    %97 = arith.cmpi ne, %96, %c0_i32_36 : i32
    scf.if %97 {
      %c0_37 = arith.constant 0 : index
      %c0_38 = arith.constant 0 : index
      %c0_39 = arith.constant 0 : index
      %98 = vector.load %arg5[%c0_37, %c0_38, %c0_39] : memref<3x64x64xf32, #tpu.memory_space<vmem>>, vector<3x64x64xf32>
      %99 = tpu.iota {dimensions = array<i32: 0>} : vector<64x64xi32>
      %100 = tpu.iota {dimensions = array<i32: 1>} : vector<64x64xi32>
      %101 = arith.addi %99, %100 : vector<64x64xi32>
      %c63_i32 = arith.constant 63 : i32
      %102 = vector.broadcast %c63_i32 : i32 to vector<64x64xi32>
      %103 = arith.cmpi eq, %101, %102 : vector<64x64xi32>
      %104 = arith.extui %103 : vector<64x64xi1> to vector<64x64xi32>
      %105 = arith.sitofp %104 : vector<64x64xi32> to vector<64x64xf32>
      %106 = vector.extract_strided_slice %98 {offsets = [0, 0, 0], sizes = [1, 64, 64], strides = [1, 1, 1]} : vector<3x64x64xf32> to vector<1x64x64xf32>
      %107 = vector.shape_cast %106 : vector<1x64x64xf32> to vector<64x64xf32>
      %c0_40 = arith.constant 0 : index
      %c0_41 = arith.constant 0 : index
      %c0_42 = arith.constant 0 : index
      %c0_43 = arith.constant 0 : index
      %c0_44 = arith.constant 0 : index
      %108 = vector.load %arg4[%c0_40, %c0_41, %c0_42, %c0_43, %c0_44] : memref<1x1x3x64x64xf32, #tpu.memory_space<vmem>>, vector<1x1x1x64x64xf32>
      %109 = vector.shape_cast %108 : vector<1x1x1x64x64xf32> to vector<64x64xf32>
      %110 = vector.shape_cast %107 : vector<64x64xf32> to vector<1x1x1x64x64xf32>
      tpu.vector_store %arg4[%c0_40, %c0_41, %c0_42, %c0_43, %c0_44], %110 {strides = array<i32>} : memref<1x1x3x64x64xf32, #tpu.memory_space<vmem>>, vector<1x1x1x64x64xf32>,
      %111 = vector.extract_strided_slice %98 {offsets = [1, 0, 0], sizes = [1, 64, 64], strides = [1, 1, 1]} : vector<3x64x64xf32> to vector<1x64x64xf32>
      %112 = vector.shape_cast %111 : vector<1x64x64xf32> to vector<64x64xf32>
      %cst_45 = arith.constant dense<0.000000e+00> : vector<64x64xf32>
      %113 = tpu.matmul %105, %112, %cst_45 {dimension_numbers = #tpu.dot_dimension_numbers<[1], [0], [0], [1], [0, 0, 1, 1], [], []>} : vector<64x64xf32>, vector<64x64xf32>, vector<64x64xf32> -> vector<64x64xf32>
      %c0_46 = arith.constant 0 : index
      %c0_47 = arith.constant 0 : index
      %c1_48 = arith.constant 1 : index
      %c0_49 = arith.constant 0 : index
      %c0_50 = arith.constant 0 : index
      %114 = vector.load %arg4[%c0_46, %c0_47, %c1_48, %c0_49, %c0_50] : memref<1x1x3x64x64xf32, #tpu.memory_space<vmem>>, vector<1x1x1x64x64xf32>
      %115 = vector.shape_cast %114 : vector<1x1x1x64x64xf32> to vector<64x64xf32>
      %116 = vector.shape_cast %113 : vector<64x64xf32> to vector<1x1x1x64x64xf32>
      tpu.vector_store %arg4[%c0_46, %c0_47, %c1_48, %c0_49, %c0_50], %116 {strides = array<i32>} : memref<1x1x3x64x64xf32, #tpu.memory_space<vmem>>, vector<1x1x1x64x64xf32>,
      %117 = vector.extract_strided_slice %98 {offsets = [2, 0, 0], sizes = [1, 64, 64], strides = [1, 1, 1]} : vector<3x64x64xf32> to vector<1x64x64xf32>
      %118 = vector.shape_cast %117 : vector<1x64x64xf32> to vector<64x64xf32>
      %cst_51 = arith.constant dense<0.000000e+00> : vector<64x64xf32>
      %119 = tpu.matmul %105, %118, %cst_51 {dimension_numbers = #tpu.dot_dimension_numbers<[1], [0], [0], [1], [0, 0, 1, 1], [], []>} : vector<64x64xf32>, vector<64x64xf32>, vector<64x64xf32> -> vector<64x64xf32>
      %cst_52 = arith.constant dense<0.000000e+00> : vector<64x64xf32>
      %120 = tpu.matmul %119, %105, %cst_52 {dimension_numbers = #tpu.dot_dimension_numbers<[1], [0], [0], [1], [0, 0, 1, 1], [], []>} : vector<64x64xf32>, vector<64x64xf32>, vector<64x64xf32> -> vector<64x64xf32>
      %c0_53 = arith.constant 0 : index
      %c0_54 = arith.constant 0 : index
      %c2_55 = arith.constant 2 : index
      %c0_56 = arith.constant 0 : index
      %c0_57 = arith.constant 0 : index
      %121 = vector.load %arg4[%c0_53, %c0_54, %c2_55, %c0_56, %c0_57] : memref<1x1x3x64x64xf32, #tpu.memory_space<vmem>>, vector<1x1x1x64x64xf32>
      %122 = vector.shape_cast %121 : vector<1x1x1x64x64xf32> to vector<64x64xf32>
      %123 = vector.shape_cast %120 : vector<64x64xf32> to vector<1x1x1x64x64xf32>
      tpu.vector_store %arg4[%c0_53, %c0_54, %c2_55, %c0_56, %c0_57], %123 {strides = array<i32>} : memref<1x1x3x64x64xf32, #tpu.memory_space<vmem>>, vector<1x1x1x64x64xf32>,
    } else {
    }
    return
  }
  func.func @transform_0(%arg0: i32, %arg1: i32, %arg2: i32) -> (i32, i32, i32) {
    %c1_i32 = arith.constant 1 : i32
    %0 = arith.muli %arg1, %c1_i32 : i32
    %1 = arith.addi %0, %arg2 : i32
    %c0_i32 = arith.constant 0 : i32
    %c0_i32_0 = arith.constant 0 : i32
    return %arg0, %c0_i32, %1 : i32, i32, i32
  }
  func.func @transform_1(%arg0: i32, %arg1: i32, %arg2: i32) -> (i32, i32, i32, i32, i32) {
    %c0_i32 = arith.constant 0 : i32
    %c0_i32_0 = arith.constant 0 : i32
    %c0_i32_1 = arith.constant 0 : i32
    %c0_i32_2 = arith.constant 0 : i32
    return %arg0, %arg1, %c0_i32, %c0_i32_0, %c0_i32_1 : i32, i32, i32, i32, i32
  }
}

</mosaic_0001>

<bundles_post_ra>
// kernel: tpu_custom_call.1
= control target key start
LH: loop header
LB: loop body
LE: loop exit
PB: predicated region body
PF: predicated region fallthrough
CT: control target
= control target key end

     0   :  { %6 = vsyncpa [#allocation4], 0  ;;  %s3076_s0 = inlined_call_operand.vmem [shape: f32[2,3,256], index: 0, kind: input, shape index: {}]   ;;  %s3077_s1 = inlined_call_operand.hbm [shape: f32[2,1,3,64,64], index: 1, kind: output, shape index: {}]  }
   0x1   :  { %8 = vsyncpa [#allocation4 + $0x1], 0  ;;  %s2206_s6 = smov 0   ;;  %s2208_s7 = smov 0  }
   0x2   :  { %s2210_s8 = smov 0   ;;  %s2212_s9 = smov 0  }
   0x3   :  { %s2214_s10 = smov 0   ;;  %s2216_s11 = smov 0  }
   0x4 LB: > { %s1643_s12 = sadd.s32 4294967295, %s2189_s11   ;;  %s1644_s13 = sadd.s32 4294967294, %s2189_s11   ;;  %s2189_s11 = sphi %s2216_s11, %s14_s11   ;;  %s2185_s10 = sphi %s2214_s10, %s3103_s10   ;;  %s2181_s9 = sphi %s2212_s9, %s3102_s9   ;;  %s2177_s8 = sphi %s2210_s8, %s3101_s8   ;;  %s2173_s7 = sphi %s2208_s7, %s3100_s7   ;;  %s2169_s6 = sphi %s2206_s6, %s3099_s6  }
   0x5   : > { %s33_s14 = sadd.s32 1, %s2185_s10  ;;  %s72_s15 = sadd.s32 1, %s2177_s8 }
   0x6   : > { %p35_p0 = scmp.ge.s32.totalorder %s33_s14, 2  ;;  %p82_p1 = scmp.ne.s32.totalorder %s2177_s8, %s2173_s7 }
   0x7   : > { %p83_p2 = scmp.eq.s32.totalorder %s1643_s12, 1  ;;  %p88_p3 = scmp.ne.s32.totalorder %s2173_s7, %s2169_s6 }
   0x8   : > { %s3105_s14 = smov (%p35_p0, %s33_s14), 0  ;;  %p89_p5 = scmp.eq.s32.totalorder %s1644_s13, 1 }
   0x9   : > { %p2246_p4 = por %p83_p2, %p82_p1  ;;  %s67_s17 = ssub.s32 %s2185_s10, %s3105_s14 }
   0xa   : > { %p1647_p6 = scmp.ge.s32.totalorder %s2189_s11, 1  ;;  %p70_p7 = scmp.eq.s32.totalorder %s67_s17, 0 }
   0xb   : > { %p2253_p8 = por %p89_p5, %p88_p3  ;;  %p122_p9 = scmp.lt.s32.totalorder %s2189_s11, 3 }
   0xc   : > { %s2259_s19 = scalar_select %p70_p7, %s2177_s8, %s72_s15  }
   0xd   : > { %p123_p10 = pnand %p1647_p6, %p122_p9 }
   0xf   : > { %126 = sbr.rel (%p123_p10) target bundleno = 876 (0x36c), region = 24 }
  0x16   : > { %p149_p11 = scmp.lt.s32.totalorder %s2181_s9, 1  ;;  %v3078_v0 = vlaneseq  ;;  %vm163_vm2 = vcmask 523264   ;;  %s144_s25 = sand.u32 1, %s2173_s7  }
  0x17   : > { %s1950_s26 = smul.u32 192, %s144_s25  ;;  %s3030_s4 = scalar_lea.sflag [#allocation4], %s144_s25 }
  0x18   : > { %s150_s20 = scalar_select %p149_p11, %s2181_s9, 1  ;;  %v2264_v1 = vshrl.u32 %v3078_v0, 7 }
  0x19   : > { %s2835_s27 = scalar_lea.vmem [#allocation3], %s1950_s26  ;;  %s1951_s28 = smul.u32 3072, %s2181_s9 }
  0x1a   : > { %s1713_s21 = sshll.u32 %s150_s20, 3  ;;  %v2270_v5 = vadd.s32 8, %v2264_v1  ;;  %v2273_v8 = vadd.s32 16, %v2264_v1  ;;  %v2276_v9 = vadd.s32 24, %v2264_v1  ;;  %v2279_v10 = vadd.s32 32, %v2264_v1  ;;  %s1561_s29 = sshll.u32 %s2835_s27, 4  ;;  %s3022_s29 = int_to_ptr.vmem [resolvable:$true] %s1561_s29 }
  0x1b   : > { %s156_s24 = scalar_lea.vmem %s3076_s0, %s1713_s21  ;;  %v2282_v12 = vadd.s32 40, %v2264_v1  ;;  %v198_v13 = vcvt.s32.f32 %v2264_v1  ;;  %v2288_v17 = vadd.s32 48, %v2264_v1  ;;  %v2291_v18 = vadd.s32 56, %v2264_v1  ;;  %s3020_s3 = scalar_lea.hbm %s3077_s1, %s1951_s28 }
  0x1c   : > { %v188_v2 = vld [vmem:[%s156_s24] sm:$0x77]  ;;  %3086 = vst [vmem:[#allocation6_spill] sm:$0xff] %v2276_v9  ;;  %3087 = vst [vmem:[#allocation7_spill] sm:$0xff] %v2279_v10  ;;  %v199_v14 = vcvt.s32.f32 %v2270_v5  ;;  %v200_v16 = vcvt.s32.f32 %v2273_v8  ;;  %v201_v19 = vcvt.s32.f32 %v2276_v9  ;;  %v202_v20 = vcvt.s32.f32 %v2279_v10  ;;  %s2111_s5 = scalar_lea.vmem %s3022_s29, 3072  ;;  %s2193_s9 = smov [#allocation3]  }
  0x1d   : > { %v230_v3 = vmul.f32 %v188_v2, %v188_v2  ;;  %v248_v4 = vadd.f32 1e-06, %v188_v2  ;;  %3088 = vst [vmem:[#allocation8_spill] sm:$0xff] %v2282_v12  ;;  %3089 = vst [vmem:[#allocation9_spill] sm:$0xff] %v2288_v17  ;;  %v203_v22 = vcvt.s32.f32 %v2282_v12  ;;  %v206_v23 = vmul.f32 0.0952381, %v198_v13  ;;  %p2112_p12 = scmp.ne.s32.totalorder %s3022_s29, %s2111_s5 }
  0x1e   : > { %3090 = vst [vmem:[#allocation10_spill] sm:$0xff] %v2291_v18  ;;  %v207_v24 = vmul.f32 0.0952381, %v199_v14  ;;  %v208_v25 = vmul.f32 0.0952381, %v200_v16  ;;  %v204_v26 = vcvt.s32.f32 %v2288_v17  ;;  %v205_v27 = vcvt.s32.f32 %v2291_v18  ;;  %s2115_s12 = sshll.u32 %s2193_s9, 4  ;;  %s2116_s12 = int_to_ptr.vmem [resolvable:$false] %s2115_s12 }
  0x1f   : > { %v1650_v6 = vrot.slane %v230_v3, 9  ;;  %v1651_v7 = vrot.slane %v230_v3, 10  ;;  %2011 = vlog2.f32 %v248_v4  ;;  %v209_v28 = vmul.f32 0.0952381, %v201_v19  ;;  %p2113_p13 = pnand %p2112_p12, %p2246_p4  ;;  %s2117_s13 = scalar_lea.vmem %s2116_s12, 6144 }
  0x20   : > { %v210_v29 = vmul.f32 0.0952381, %v202_v20  ;;  %v211_v31 = vmul.f32 0.0952381, %v203_v22  ;;  %v214_v32 = vadd.f32 -3.0, %v206_v23  ;;  %v215_v34 = vadd.f32 -3.0, %v207_v24  ;;  %p2118_p1 = scmp.lt.s32.totalorder %s3022_s29, %s2116_s12  ;;  %p2119_p2 = scmp.lt.s32.totalorder %s2117_s13, %s2111_s5 }
  0x21   : > { %v235_v11 = vadd.f32 %v1650_v6, %v230_v3  ;;  %v216_v35 = vadd.f32 -3.0, %v208_v25  ;;  %v212_v36 = vmul.f32 0.0952381, %v204_v26  ;;  %v213_v37 = vmul.f32 0.0952381, %v205_v27  ;;  %p2114_p0 = pneg %p2113_p13 }
  0x22   : > { %v217_v40 = vadd.f32 -3.0, %v209_v28  ;;  %v218_v41 = vadd.f32 -3.0, %v210_v29  ;;  %v2299_v42 = vsub.s32 0, %v2264_v1  ;;  %v264_v43 = vsub.s32 4, %v2264_v1  ;;  %p2120_p3 = por %p2119_p2, %p2118_p1 }
  0x23   : > { %v239_v15 = vadd.f32 %v1651_v7, %v235_v11  ;;  %v526_v44 = vsub.s32 1, %v2264_v1  ;;  %v219_v45 = vadd.f32 -3.0, %v211_v31  ;;  %v2303_v46 = vmul.f32 50.0, %v214_v32 }
  0x24   : > { %v530_v49 = vsub.s32 5, %v2264_v1  ;;  %v2306_v50 = vmul.f32 50.0, %v215_v34  ;;  %v2308_v51 = vmul.f32 50.0, %v216_v35  ;;  %v220_v52 = vadd.f32 -3.0, %v212_v36  ;;  %p2121_p5 = pnand %p2120_p3, %p2114_p0 }
  0x25   : > { %v240_v21 = vadd.f32 1e-06, %v239_v15  ;;  %v221_v53 = vadd.f32 -3.0, %v213_v37  ;;  %v2312_v56 = vmul.f32 50.0, %v217_v40  ;;  %v2314_v57 = vmul.f32 50.0, %v218_v41 }
  0x26   : > { %v2316_v60 = vmul.f32 50.0, %v219_v45  ;;  %v2321_v4 = vmul.f32 50.0, %v220_v52 }
  0x27   : > { %2013 = vrsqrt.f32 %v240_v21  ;;  %vm243_vm0 = vcmp.eq.f32.partialorder %v240_v21, inf  ;;  %vm245_vm1 = vcmp.eq.f32.partialorder %v240_v21, 0.0  ;;  %v246_v59 = vand.u32 2147483648, %v240_v21 }
  0x28   : > { %v2323_v6 = vmul.f32 50.0, %v221_v53 }
  0x29   : > { %v2012_v30 = vpop.eup %2011 }
  0x2a   : > { %v250_v33 = vmul.f32 0.6931472, %v2012_v30 }
  0x2c   : > { %v1653_v38 = vrot.slane %v250_v33, 10  ;;  %v1652_v39 = vrot.slane %v250_v33, 9 }
  0x2e   : > { %v391_v47 = vsub.f32 %v250_v33, %v1653_v38  ;;  %v255_v48 = vsub.f32 %v250_v33, %v1652_v39 }
  0x30   : > { %v392_v54 = vmul.f32 50.0, %v391_v47  ;;  %v2310_v55 = vmul.f32 50.0, %v255_v48 }
  0x31   : > { %v2014_v58 = vpop.eup %2013 }
  0x32   : > { %v242_v61 = vmul.f32 %v2014_v58, %v240_v21  ;;  %v401_v62 = vrot.slane %v392_v54, %v264_v43  ;;  %v397_v63 = vrot.slane %v392_v54, %v2299_v42  ;;  %v531_v2 = vrot.slane %v2310_v55, %v530_v49 }
  0x33   : > { %v527_v3 = vrot.slane %v2310_v55, %v526_v44  ;;  %v265_v7 = vrot.slane %v2310_v55, %v264_v43  ;;  %v261_v22 = vrot.slane %v2310_v55, %v2299_v42 }
  0x34   : > { %v244_v11 = vsel %vm243_vm0, %v240_v21, %v242_v61  ;;  %v2327_v13 = vrot.slane %v401_v62, %v2299_v42  ;;  %v2330_v14 = vrot.slane %v397_v63, %v2299_v42  ;;  %v2332_v15 = vrot.slane %v531_v2, %v526_v44 }
  0x35   : > { %v247_v16 = vsel %vm245_vm1, %v246_v59, %v244_v11  ;;  %v2334_v19 = vrot.slane %v527_v3, %v526_v44  ;;  %v2337_v20 = vrot.slane %v265_v7, %v2299_v42 }
  0x36   : > { %v413_v21 = vsub.f32 %v2327_v13, %v2303_v46  ;;  %v415_v23 = vsub.f32 %v2327_v13, %v2306_v50  ;;  %v658_v24 = vrot.slane %v247_v16, %v2299_v42  ;;  %v662_v25 = vrot.slane %v247_v16, %v264_v43 }
  0x37   : > { %v412_v26 = vsub.f32 %v2330_v14, %v2303_v46  ;;  %v414_v27 = vsub.f32 %v2330_v14, %v2306_v50  ;;  %v543_v28 = vsub.f32 %v2332_v15, %v2303_v46  ;;  %v545_v29 = vsub.f32 %v2332_v15, %v2306_v50 }
  0x38   : > { %v429_v30 = vmul.f32 %v413_v21, %v413_v21  ;;  %v431_v31 = vmul.f32 %v415_v23, %v415_v23  ;;  %v2355_v32 = vrot.slane %v658_v24, %v2299_v42  ;;  %v2358_v33 = vrot.slane %v662_v25, %v2299_v42 }
  0x39   : > { %v428_v34 = vmul.f32 %v412_v26, %v412_v26  ;;  %v430_v35 = vmul.f32 %v414_v27, %v414_v27  ;;  %v559_v36 = vmul.f32 %v543_v28, %v543_v28  ;;  %v561_v37 = vmul.f32 %v545_v29, %v545_v29 }
  0x3a   : > { %v445_v38 = vadd.f32 1.0, %v429_v30  ;;  %v447_v39 = vadd.f32 1.0, %v431_v31  ;;  %v542_v40 = vsub.f32 %v2334_v19, %v2303_v46  ;;  %v544_v41 = vsub.f32 %v2334_v19, %v2306_v50 }
  0x3b   : > { %v444_v43 = vadd.f32 1.0, %v428_v34  ;;  %v2364_v44 = vadd.f32 1.0, %v430_v35  ;;  %v2366_v45 = vadd.f32 1.0, %v559_v36  ;;  %v2368_v47 = vadd.f32 1.0, %v561_v37 }
  0x3c   : > { %2015 = vrcp.f32 %v445_v38  ;;  %v558_v48 = vmul.f32 %v542_v40, %v542_v40  ;;  %v560_v49 = vmul.f32 %v544_v41, %v544_v41  ;;  %v417_v52 = vsub.f32 %v2327_v13, %v2308_v51 }
  0x3d   : > { %2017 = vrcp.f32 %v447_v39  ;;  %v419_v53 = vsub.f32 %v2327_v13, %v2312_v56  ;;  %v416_v54 = vsub.f32 %v2330_v14, %v2308_v51  ;;  %v418_v58 = vsub.f32 %v2330_v14, %v2312_v56 }
  0x3e   : > { %2019 = vrcp.f32 %v444_v43  ;;  %v2378_v59 = vadd.f32 1.0, %v558_v48  ;;  %v2380_v61 = vadd.f32 1.0, %v560_v49  ;;  %v433_v62 = vmul.f32 %v417_v52, %v417_v52 }
  0x3f   : > { %2021 = vrcp.f32 %v2364_v44  ;;  %v435_v63 = vmul.f32 %v419_v53, %v419_v53  ;;  %v432_v2 = vmul.f32 %v416_v54, %v416_v54  ;;  %v434_v3 = vmul.f32 %v418_v58, %v418_v58 }
  0x40   : > { %2023 = vrcp.f32 %v2366_v45  ;;  %v2384_v7 = vadd.f32 1.0, %v433_v62  ;;  %v547_v11 = vsub.f32 %v2332_v15, %v2308_v51  ;;  %v549_v16 = vsub.f32 %v2332_v15, %v2312_v56 }
  0x41   : > { %2025 = vrcp.f32 %v2368_v47  ;;  %v2391_v21 = vadd.f32 1.0, %v435_v63  ;;  %v2393_v23 = vadd.f32 1.0, %v432_v2  ;;  %v2395_v24 = vadd.f32 1.0, %v434_v3 }
  0x42   : > { %2027 = vrcp.f32 %v2378_v59  ;;  %v563_v25 = vmul.f32 %v547_v11, %v547_v11  ;;  %v565_v26 = vmul.f32 %v549_v16, %v549_v16  ;;  %v546_v27 = vsub.f32 %v2334_v19, %v2308_v51 }
  0x43   : > { %2029 = vrcp.f32 %v2380_v61  ;;  %v548_v28 = vsub.f32 %v2334_v19, %v2312_v56  ;;  %v421_v29 = vsub.f32 %v2327_v13, %v2314_v57  ;;  %v423_v30 = vsub.f32 %v2327_v13, %v2316_v60 }
  0x44   : > { %2031 = vrcp.f32 %v2384_v7  ;;  %v2408_v31 = vadd.f32 1.0, %v563_v25  ;;  %v2410_v34 = vadd.f32 1.0, %v565_v26  ;;  %v562_v35 = vmul.f32 %v546_v27, %v546_v27 }
  0x45   : > { %2033 = vrcp.f32 %v2391_v21  ;;  %v564_v36 = vmul.f32 %v548_v28, %v548_v28  ;;  %v437_v37 = vmul.f32 %v421_v29, %v421_v29  ;;  %v439_v40 = vmul.f32 %v423_v30, %v423_v30 }
  0x46   : > { %v2016_v41 = vpop.eup %2015  ;;  %2035 = vrcp.f32 %v2393_v23  ;;  %v2414_v48 = vadd.f32 1.0, %v562_v35  ;;  %v420_v49 = vsub.f32 %v2330_v14, %v2314_v57  ;;  %v422_v52 = vsub.f32 %v2330_v14, %v2316_v60 }
  0x47   : > { %v2018_v53 = vpop.eup %2017  ;;  %v477_v54 = vmul.f32 %v2016_v41, %v445_v38  ;;  %2037 = vrcp.f32 %v2395_v24  ;;  %v2421_v58 = vadd.f32 1.0, %v564_v36  ;;  %v2427_v62 = vrot.slane %v261_v22, %v2299_v42 }
  0x48   : > { %v2020_v63 = vpop.eup %2019  ;;  %v479_v2 = vmul.f32 %v2018_v53, %v447_v39  ;;  %2039 = vrcp.f32 %v2408_v31  ;;  %v2430_v3 = vadd.f32 1.0, %v437_v37  ;;  %v2432_v11 = vadd.f32 1.0, %v439_v40 }
  0x49   : > { %v2022_v16 = vpop.eup %2021  ;;  %v493_v38 = vsub.f32 2.0, %v477_v54  ;;  %v476_v25 = vmul.f32 %v2020_v63, %v444_v43  ;;  %2041 = vrcp.f32 %v2410_v34  ;;  %v436_v26 = vmul.f32 %v420_v49, %v420_v49 }
  0x4a   : > { %v2024_v27 = vpop.eup %2023  ;;  %v495_v28 = vsub.f32 2.0, %v479_v2  ;;  %v478_v55 = vmul.f32 %v2022_v16, %v2364_v44  ;;  %2043 = vrcp.f32 %v2414_v48  ;;  %v438_v42 = vmul.f32 %v422_v52, %v422_v52 }
  0x4b   : > { %v2026_v22 = vpop.eup %2025  ;;  %v2437_v39 = vmul.f32 %v2016_v41, %v493_v38  ;;  %v492_v29 = vsub.f32 2.0, %v476_v25  ;;  %v607_v30 = vmul.f32 %v2024_v27, %v2366_v45  ;;  %2045 = vrcp.f32 %v2421_v58 }
  0x4c   : > { %v2028_v35 = vpop.eup %2027  ;;  %v2441_v43 = vmul.f32 %v2018_v53, %v495_v28  ;;  %v494_v36 = vsub.f32 2.0, %v478_v55  ;;  %v609_v37 = vmul.f32 %v2026_v22, %v2368_v47  ;;  %2047 = vrcp.f32 %v2430_v3 }
  0x4d   : > { %v2030_v44 = vpop.eup %2029  ;;  %v2445_v40 = vmul.f32 %v2020_v63, %v492_v29  ;;  %v623_v49 = vsub.f32 2.0, %v607_v30  ;;  %v606_v41 = vmul.f32 %v2028_v35, %v2378_v59  ;;  %2049 = vrcp.f32 %v2432_v11 }
  0x4e   : > { %v2032_v52 = vpop.eup %2031  ;;  %v1846_v45 = vpack.c.bf16 %v2441_v43, %v2437_v39  ;;  %v2451_v54 = vmul.f32 %v2022_v16, %v494_v36  ;;  %v625_v53 = vsub.f32 2.0, %v609_v37  ;;  %v608_v2 = vmul.f32 %v2030_v44, %v2380_v61 }
  0x4f   : > { %v2034_v47 = vpop.eup %2033  ;;  %v639_v38 = vmul.f32 %v2024_v27, %v623_v49  ;;  %v622_v25 = vsub.f32 2.0, %v606_v41  ;;  %v481_v63 = vmul.f32 %v2032_v52, %v2384_v7  ;;  %v2455_v28 = vadd.f32 1.0, %v436_v26 }
  0x50   : > { %v2036_v55 = vpop.eup %2035  ;;  %1847 = vmatprep.subr.bf16.mxu0 %v1846_v45  ;;  %v1848_v59 = vpack.c.bf16 %v2451_v54, %v2445_v40  ;;  %v641_v29 = vmul.f32 %v2026_v22, %v625_v53  ;;  %v624_v30 = vsub.f32 2.0, %v608_v2  ;;  %v483_v16 = vmul.f32 %v2034_v47, %v2391_v21 }
  0x51   : > { %v2038_v36 = vpop.eup %2037  ;;  %v638_v37 = vmul.f32 %v2028_v35, %v622_v25  ;;  %v497_v0 = vsub.f32 2.0, %v481_v63  ;;  %v480_v61 = vmul.f32 %v2036_v55, %v2393_v23  ;;  %v2461_v27 = vadd.f32 1.0, %v438_v42 }
  0x52   : > { %v2040_v49 = vpop.eup %2039  ;;  %1849 = vmatpush1.bf16.xpose.msra.mxu0 %v1848_v59  ;;  %v2463_v7 = vpack.c.bf16 %v641_v29, %v639_v38  ;;  %v640_v26 = vmul.f32 %v2030_v44, %v624_v30  ;;  %v499_v41 = vsub.f32 2.0, %v483_v16  ;;  %v482_v45 = vmul.f32 %v2038_v36, %v2395_v24 }
  0x53   : > { %v2042_v18 = vpop.eup %2041  ;;  %v2466_v22 = vmul.f32 %v2032_v52, %v497_v0  ;;  %v496_v53 = vsub.f32 2.0, %v480_v61  ;;  %v611_v21 = vmul.f32 %v2040_v49, %v2408_v31  ;;  %2051 = vrcp.f32 %v2455_v28 }
  0x54   : > { %v2044_v35 = vpop.eup %2043  ;;  %1863 = vmatprep.subr.bf16.mxu1 %v2463_v7  ;;  %v2471_v23 = vpack.c.bf16 %v640_v26, %v638_v37  ;;  %v2473_v42 = vmul.f32 %v2034_v47, %v499_v41  ;;  %v498_v2 = vsub.f32 2.0, %v482_v45  ;;  %v613_v44 = vmul.f32 %v2042_v18, %v2410_v34 }
  0x55   : > { %v2046_v38 = vpop.eup %2045  ;;  %v2476_v24 = vmul.f32 %v2036_v55, %v496_v53  ;;  %v627_v0 = vsub.f32 2.0, %v611_v21  ;;  %v610_v52 = vmul.f32 %v2044_v35, %v2414_v48  ;;  %2053 = vrcp.f32 %v2461_v27 }
  0x56   : > { %v2048_v31 = vpop.eup %2047  ;;  %1865 = vmatpush1.bf16.xpose.msra.mxu1 %v2471_v23  ;;  %v1850_v25 = vpack.c.bf16 %v2473_v42, %v2466_v22  ;;  %v2483_v63 = vmul.f32 %v2038_v36, %v498_v2  ;;  %v629_v47 = vsub.f32 2.0, %v613_v44  ;;  %v612_v59 = vmul.f32 %v2046_v38, %v2421_v58 }
  0x57   : > { %v2050_v34 = vpop.eup %2049  ;;  %v643_v29 = vmul.f32 %v2040_v49, %v627_v0  ;;  %v626_v55 = vsub.f32 2.0, %v610_v52  ;;  %v485_v30 = vmul.f32 %v2048_v31, %v2430_v3  ;;  %v551_v48 = vsub.f32 %v2332_v15, %v2314_v57 }
  0x58   : > { %1851 = vmatprep.subr.bf16.mxu0 %v1850_v25  ;;  %v1852_v16 = vpack.c.bf16 %v2483_v63, %v2476_v24  ;;  %v645_v37 = vmul.f32 %v2042_v18, %v629_v47  ;;  %v628_v61 = vsub.f32 2.0, %v612_v59  ;;  %v487_v36 = vmul.f32 %v2050_v34, %v2432_v11 }
  0x59   : > { %v642_v26 = vmul.f32 %v2044_v35, %v626_v55  ;;  %v501_v41 = vsub.f32 2.0, %v485_v30  ;;  %v553_v58 = vsub.f32 %v2332_v15, %v2316_v60  ;;  %v567_v49 = vmul.f32 %v551_v48, %v551_v48 }
  0x5a   : > { %1853 = vmatpush1.bf16.xpose.msra.mxu0 %v1852_v16  ;;  %v2494_v45 = vpack.c.bf16 %v645_v37, %v643_v29  ;;  %v644_v3 = vmul.f32 %v2046_v38, %v628_v61  ;;  %v503_v53 = vsub.f32 2.0, %v487_v36  ;;  %v550_v21 = vsub.f32 %v2334_v19, %v2314_v57 }
  0x5b   : > { %v2498_v2 = vmul.f32 %v2048_v31, %v501_v41  ;;  %v569_v18 = vmul.f32 %v553_v58, %v553_v58  ;;  %v583_v44 = vadd.f32 1.0, %v567_v49  ;;  %v552_v11 = vsub.f32 %v2334_v19, %v2316_v60 }
  0x5c   : > { %1867 = vmatprep.subr.bf16.mxu1 %v2494_v45  ;;  %v2503_v35 = vpack.c.bf16 %v644_v3, %v642_v26  ;;  %v2505_v0 = vmul.f32 %v2050_v34, %v503_v53  ;;  %v566_v52 = vmul.f32 %v550_v21, %v550_v21  ;;  %v425_v38 = vsub.f32 %v2327_v13, %v2321_v4 }
  0x5d   : > { %v2052_v25 = vpop.eup %2051  ;;  %v585_v47 = vadd.f32 1.0, %v569_v18  ;;  %2055 = vrcp.f32 %v583_v44  ;;  %v568_v31 = vmul.f32 %v552_v11, %v552_v11  ;;  %v427_v59 = vsub.f32 %v2327_v13, %v2323_v6 }
  0x5e   : > { %1869 = vmatpush1.bf16.xpose.msra.mxu1 %v2503_v35  ;;  %v1854_v29 = vpack.c.bf16 %v2505_v0, %v2498_v2  ;;  %v484_v55 = vmul.f32 %v2052_v25, %v2455_v28  ;;  %v582_v34 = vadd.f32 1.0, %v566_v52  ;;  %v441_v30 = vmul.f32 %v425_v38, %v425_v38 }
  0x5f   : > { %v2054_v48 = vpop.eup %2053  ;;  %2057 = vrcp.f32 %v585_v47  ;;  %v584_v16 = vadd.f32 1.0, %v568_v31  ;;  %v443_v37 = vmul.f32 %v427_v59, %v427_v59  ;;  %v424_v61 = vsub.f32 %v2330_v14, %v2321_v4 }
  0x60   : > { %1855 = vmatprep.subr.bf16.mxu0 %v1854_v29  ;;  %v486_v36 = vmul.f32 %v2054_v48, %v2461_v27  ;;  %v500_v13 = vsub.f32 2.0, %v484_v55  ;;  %2059 = vrcp.f32 %v582_v34  ;;  %v457_v26 = vadd.f32 1.0, %v441_v30 }
  0x61   : > { %2061 = vrcp.f32 %v584_v16  ;;  %v459_v41 = vadd.f32 1.0, %v443_v37  ;;  %v426_v28 = vsub.f32 %v2330_v14, %v2323_v6  ;;  %v440_v58 = vmul.f32 %v424_v61, %v424_v61 }
  0x62   : > { %v502_v49 = vsub.f32 2.0, %v486_v36  ;;  %v2520_v3 = vmul.f32 %v2052_v25, %v500_v13  ;;  %2063 = vrcp.f32 %v457_v26  ;;  %v555_v53 = vsub.f32 %v2332_v15, %v2321_v4 }
  0x63   : > { %2065 = vrcp.f32 %v459_v41  ;;  %v442_v21 = vmul.f32 %v426_v28, %v426_v28  ;;  %v456_v18 = vadd.f32 1.0, %v440_v58  ;;  %v557_v27 = vsub.f32 %v2332_v15, %v2323_v6 }
  0x64   : > { %v2526_v11 = vmul.f32 %v2054_v48, %v502_v49  ;;  %v571_v52 = vmul.f32 %v555_v53, %v555_v53  ;;  %v554_v14 = vsub.f32 %v2334_v19, %v2321_v4  ;;  %v556_v38 = vsub.f32 %v2334_v19, %v2323_v6 }
  0x65   : > { %v2532_v25 = vadd.f32 1.0, %v442_v21  ;;  %2067 = vrcp.f32 %v456_v18  ;;  %v573_v31 = vmul.f32 %v557_v27, %v557_v27  ;;  %v277_v59 = vsub.f32 %v2337_v20, %v2303_v46 }
  0x66   : > { %v1856_v29 = vpack.c.bf16 %v2526_v11, %v2520_v3  ;;  %v2538_v15 = vadd.f32 1.0, %v571_v52  ;;  %v570_v55 = vmul.f32 %v554_v14, %v554_v14  ;;  %v572_v30 = vmul.f32 %v556_v38, %v556_v38 }
  0x67   : > { %v2056_v48 = vpop.eup %2055  ;;  %2069 = vrcp.f32 %v2532_v25  ;;  %v2541_v37 = vadd.f32 1.0, %v573_v31  ;;  %v293_v19 = vmul.f32 %v277_v59, %v277_v59  ;;  %v276_v61 = vsub.f32 %v2427_v62, %v2303_v46 }
  0x68   : > { %1857 = vmatpush1.bf16.xpose.msra.mxu0 %v1856_v29  ;;  %v615_v36 = vmul.f32 %v2056_v48, %v583_v44  ;;  %2071 = vrcp.f32 %v2538_v15  ;;  %v2546_v13 = vadd.f32 1.0, %v570_v55  ;;  %v2548_v28 = vadd.f32 1.0, %v572_v30 }
  0x69   : > { %v2058_v58 = vpop.eup %2057  ;;  %2073 = vrcp.f32 %v2541_v37  ;;  %v2551_v49 = vadd.f32 1.0, %v293_v19  ;;  %v292_v53 = vmul.f32 %v276_v61, %v276_v61  ;;  %v279_v21 = vsub.f32 %v2337_v20, %v2306_v50 }
  0x6a   : > { %v2060_v27 = vpop.eup %2059  ;;  %v617_v52 = vmul.f32 %v2058_v58, %v585_v47  ;;  %v631_v46 = vsub.f32 2.0, %v615_v36  ;;  %2075 = vrcp.f32 %v2546_v13  ;;  %v278_v44 = vsub.f32 %v2427_v62, %v2306_v50 }
  0x6b   : > { %v2062_v14 = vpop.eup %2061  ;;  %v614_v38 = vmul.f32 %v2060_v27, %v582_v34  ;;  %2077 = vrcp.f32 %v2548_v28  ;;  %v2559_v31 = vadd.f32 1.0, %v292_v53  ;;  %v295_v59 = vmul.f32 %v279_v21, %v279_v21 }
  0x6c   : > { %v2064_v29 = vpop.eup %2063  ;;  %v633_v55 = vsub.f32 2.0, %v617_v52  ;;  %v647_v30 = vmul.f32 %v2056_v48, %v631_v46  ;;  %v616_v19 = vmul.f32 %v2062_v14, %v584_v16  ;;  %2079 = vrcp.f32 %v2551_v49 }
  0x6d   : > { %v2066_v47 = vpop.eup %2065  ;;  %v630_v61 = vsub.f32 2.0, %v614_v38  ;;  %v489_v36 = vmul.f32 %v2064_v29, %v457_v26  ;;  %2081 = vrcp.f32 %v2559_v31  ;;  %v2563_v17 = vadd.f32 1.0, %v295_v59 }
  0x6e   : > { %v649_v50 = vmul.f32 %v2058_v58, %v633_v55  ;;  %v632_v34 = vsub.f32 2.0, %v616_v19  ;;  %v491_v12 = vmul.f32 %v2066_v47, %v459_v41  ;;  %v294_v10 = vmul.f32 %v278_v44, %v278_v44 }
  0x6f   : > { %v2068_v53 = vpop.eup %2067  ;;  %v646_v9 = vmul.f32 %v2060_v27, %v630_v61  ;;  %v505_v21 = vsub.f32 2.0, %v489_v36  ;;  %2083 = vrcp.f32 %v2563_v17  ;;  %v281_v16 = vsub.f32 %v2337_v20, %v2308_v51 }
  0x70   : > { %v2568_v48 = vpack.c.bf16 %v649_v50, %v647_v30  ;;  %v648_v52 = vmul.f32 %v2062_v14, %v632_v34  ;;  %v507_v26 = vsub.f32 2.0, %v491_v12  ;;  %v488_v46 = vmul.f32 %v2068_v53, %v456_v18 }
  0x71   : > { %v2070_v38 = vpop.eup %2069  ;;  %v2570_v59 = vmul.f32 %v2064_v29, %v505_v21  ;;  %v2572_v58 = vadd.f32 1.0, %v294_v10  ;;  %v297_v41 = vmul.f32 %v281_v16, %v281_v16  ;;  %v280_v27 = vsub.f32 %v2427_v62, %v2308_v51 }
  0x72   : > { %v2072_v44 = vpop.eup %2071  ;;  %1871 = vmatprep.subr.bf16.mxu1 %v2568_v48  ;;  %v2577_v55 = vpack.c.bf16 %v648_v52, %v646_v9  ;;  %v2579_v19 = vmul.f32 %v2066_v47, %v507_v26  ;;  %v490_v14 = vmul.f32 %v2070_v38, %v2532_v25  ;;  %v504_v12 = vsub.f32 2.0, %v488_v46 }
  0x73   : > { %v2074_v18 = vpop.eup %2073  ;;  %v619_v29 = vmul.f32 %v2072_v44, %v2538_v15  ;;  %2085 = vrcp.f32 %v2572_v58  ;;  %v2584_v10 = vadd.f32 1.0, %v297_v41  ;;  %v296_v30 = vmul.f32 %v280_v27, %v280_v27 }
  0x74   : > { %v2076_v61 = vpop.eup %2075  ;;  %1873 = vmatpush1.bf16.xpose.msra.mxu1 %v2577_v55  ;;  %v1858_v9 = vpack.c.bf16 %v2579_v19, %v2570_v59  ;;  %v506_v51 = vsub.f32 2.0, %v490_v14  ;;  %v2589_v47 = vmul.f32 %v2068_v53, %v504_v12  ;;  %v621_v25 = vmul.f32 %v2074_v18, %v2541_v37 }
  0x75   : > { %v2078_v36 = vpop.eup %2077  ;;  %v635_v50 = vsub.f32 2.0, %v619_v29  ;;  %v618_v15 = vmul.f32 %v2076_v61, %v2546_v13  ;;  %2087 = vrcp.f32 %v2584_v10  ;;  %v2594_v34 = vadd.f32 1.0, %v296_v30 }
  0x76   : > { %v2080_v21 = vpop.eup %2079  ;;  %1859 = vmatprep.subr.bf16.mxu0 %v1858_v9  ;;  %v2596_v16 = vmul.f32 %v2070_v38, %v506_v51  ;;  %v637_v52 = vsub.f32 2.0, %v621_v25  ;;  %v620_v26 = vmul.f32 %v2078_v36, %v2548_v28  ;;  %v283_v53 = vsub.f32 %v2337_v20, %v2312_v56 }
  0x77   : > { %v2082_v46 = vpop.eup %2081  ;;  %v651_v37 = vmul.f32 %v2072_v44, %v635_v50  ;;  %v634_v41 = vsub.f32 2.0, %v618_v15  ;;  %v341_v27 = vmul.f32 %v2080_v21, %v2551_v49  ;;  %2089 = vrcp.f32 %v2594_v34 }
  0x78   : > { %v1860_v13 = vpack.c.bf16 %v2596_v16, %v2589_v47  ;;  %v653_v14 = vmul.f32 %v2074_v18, %v637_v52  ;;  %v636_v12 = vsub.f32 2.0, %v620_v26  ;;  %v340_v38 = vmul.f32 %v2082_v46, %v2559_v31 }
  0x79   : > { %v2084_v29 = vpop.eup %2083  ;;  %v650_v30 = vmul.f32 %v2076_v61, %v634_v41  ;;  %v357_v28 = vsub.f32 2.0, %v341_v27  ;;  %v299_v9 = vmul.f32 %v283_v53, %v283_v53  ;;  %v282_v51 = vsub.f32 %v2427_v62, %v2312_v56 }
  0x7a   : > { %1861 = vmatpush1.bf16.xpose.msra.mxu0 %v1860_v13  ;;  %v2608_v44 = vpack.c.bf16 %v653_v14, %v651_v37  ;;  %v652_v49 = vmul.f32 %v2078_v36, %v636_v12  ;;  %v356_v25 = vsub.f32 2.0, %v340_v38  ;;  %v343_v50 = vmul.f32 %v2084_v29, %v2563_v17 }
  0x7b   : > { %v373_v15 = vmul.f32 %v2080_v21, %v357_v28  ;;  %1879 = vmatprep.subr.bf16.mxu0 %v2463_v7  ;;  %v2612_v18 = vadd.f32 1.0, %v299_v9  ;;  %v298_v31 = vmul.f32 %v282_v51, %v282_v51  ;;  %v285_v61 = vsub.f32 %v2337_v20, %v2314_v57 }
  0x7c   : > { %1875 = vmatprep.subr.bf16.mxu1 %v2608_v44  ;;  %v2617_v52 = vpack.c.bf16 %v652_v49, %v650_v30  ;;  %v372_v56 = vmul.f32 %v2082_v46, %v356_v25  ;;  %v359_v26 = vsub.f32 2.0, %v343_v50  ;;  %v284_v36 = vsub.f32 %v2427_v62, %v2314_v57 }
  0x7d   : > { %v2086_v53 = vpop.eup %2085  ;;  %v674_v17 = vmul.f32 %v2358_v33, %v373_v15  ;;  %2091 = vrcp.f32 %v2612_v18  ;;  %v2623_v7 = vadd.f32 1.0, %v298_v31  ;;  %v301_v21 = vmul.f32 %v285_v61, %v285_v61 }
  0x7e   : > { %1877 = vmatpush1.bf16.xpose.msra.mxu1 %v2617_v52  ;;  %v673_v37 = vmul.f32 %v2355_v32, %v372_v56  ;;  %v375_v41 = vmul.f32 %v2084_v29, %v359_v26  ;;  %v342_v27 = vmul.f32 %v2086_v53, %v2572_v58  ;;  %v300_v46 = vmul.f32 %v284_v36, %v284_v36 }
  0x7f   : > { %v2088_v13 = vpop.eup %2087  ;;  %777 = vmatprep.mubr.f32.mxu0 %v674_v17  ;;  %908 = vmatprep.mubr.f32.mxu1 %v674_v17  ;;  %2093 = vrcp.f32 %v2623_v7  ;;  %v2629_v57 = vadd.f32 1.0, %v301_v21  ;;  %v287_v14 = vsub.f32 %v2337_v20, %v2316_v60  ;;  %v286_v12 = vsub.f32 %v2427_v62, %v2316_v60 }
  0x80   : > { %v676_v38 = vmul.f32 %v2358_v33, %v375_v41  ;;  %v358_v30 = vsub.f32 2.0, %v342_v27  ;;  %v345_v29 = vmul.f32 %v2088_v13, %v2584_v10  ;;  %v2637_v58 = vadd.f32 1.0, %v300_v46 }
  0x81   : > { %v2090_v28 = vpop.eup %2089  ;;  %778 = vmatmul.mubr.f32.vlgmr.msra.gmra.mrb[0].mxu0 %v673_v37  ;;  %2095 = vrcp.f32 %v2629_v57  ;;  %v303_v9 = vmul.f32 %v287_v14, %v287_v14  ;;  %v302_v51 = vmul.f32 %v286_v12, %v286_v12  ;;  %v289_v49 = vsub.f32 %v2337_v20, %v2321_v4 }
  0x82   : > { %1881 = vmatpush1.bf16.xpose.msra.mxu0 %v2471_v23  ;;  %782 = vmatprep.mubr.f32.mxu0 %v676_v38  ;;  %v374_v60 = vmul.f32 %v2086_v53, %v358_v30  ;;  %v361_v25 = vsub.f32 2.0, %v345_v29  ;;  %v344_v50 = vmul.f32 %v2090_v28, %v2594_v34  ;;  %2097 = vrcp.f32 %v2637_v58 }
  0x83   : > { %1883 = vmatprep.subr.bf16.mxu0 %v2494_v45  ;;  %v2646_v10 = vadd.f32 1.0, %v303_v9  ;;  %v2648_v15 = vadd.f32 1.0, %v302_v51  ;;  %v305_v31 = vmul.f32 %v289_v49, %v289_v49  ;;  %v288_v61 = vsub.f32 %v2427_v62, %v2321_v4 }
  0x84   : > { %v675_v56 = vmul.f32 %v2355_v32, %v374_v60  ;;  %v377_v23 = vmul.f32 %v2088_v13, %v361_v25  ;;  %v360_v26 = vsub.f32 2.0, %v344_v50  ;;  %v291_v36 = vsub.f32 %v2337_v20, %v2323_v6 }
  0x85   : > { %909 = vmatmul.mubr.f32.vlgmr.msra.gmra.mrb[0].mxu1 %v673_v37  ;;  %2099 = vrcp.f32 %v2646_v10  ;;  %v2656_v34 = vadd.f32 1.0, %v305_v31  ;;  %v304_v45 = vmul.f32 %v288_v61, %v288_v61  ;;  %v290_v53 = vsub.f32 %v2427_v62, %v2323_v6 }
  0x86   : > { %783 = vmatmul.mubr.f32.gmra.mrb[2].mxu0 %v675_v56  ;;  %v678_v17 = vmul.f32 %v2358_v33, %v377_v23  ;;  %913 = vmatprep.mubr.f32.mxu1 %v676_v38  ;;  %v376_v4 = vmul.f32 %v2090_v28, %v360_v26  ;;  %2101 = vrcp.f32 %v2648_v15  ;;  %v307_v21 = vmul.f32 %v291_v36, %v291_v36 }
  0x87   : > { %v2092_v41 = vpop.eup %2091  ;;  %2103 = vrcp.f32 %v2656_v34  ;;  %v2663_v20 = vadd.f32 1.0, %v304_v45  ;;  %v306_v37 = vmul.f32 %v290_v53, %v290_v53  ;;  %v2667_v27 = vmul.f32 %v2358_v33, %v2437_v39 }
  0x88   : > { %787 = vmatprep.mubr.f32.mxu0 %v678_v17  ;;  %v677_v6 = vmul.f32 %v2355_v32, %v376_v4  ;;  %v347_v62 = vmul.f32 %v2092_v41, %v2612_v18  ;;  %v2671_v46 = vadd.f32 1.0, %v307_v21  ;;  %v2675_v13 = vmul.f32 %v2358_v33, %v2441_v43 }
  0x89   : > { %v2094_v14 = vpop.eup %2093  ;;  %914 = vmatmul.mubr.f32.gmra.mrb[2].mxu1 %v675_v56  ;;  %2105 = vrcp.f32 %v2663_v20  ;;  %v2678_v12 = vadd.f32 1.0, %v306_v37  ;;  %v2682_v39 = vmul.f32 %v2358_v33, %v2466_v22  ;;  %v2690_v43 = vmul.f32 %v2358_v33, %v2473_v42 }
  0x8a   : > { %788 = vmatmul.mubr.f32.gmra.mrb[4].mxu0 %v677_v6  ;;  %v363_v38 = vsub.f32 2.0, %v347_v62  ;;  %918 = vmatprep.mubr.f32.mxu1 %v678_v17  ;;  %v346_v18 = vmul.f32 %v2094_v14, %v2623_v7  ;;  %2107 = vrcp.f32 %v2671_v46  ;;  %v2694_v22 = vmul.f32 %v2358_v33, %v2498_v2 }
  0x8b   : > { %v2096_v30 = vpop.eup %2095  ;;  %1885 = vmatpush1.bf16.xpose.msra.mxu0 %v2503_v35  ;;  %2109 = vrcp.f32 %v2678_v12  ;;  %v2701_v51 = vmul.f32 %v2358_v33, %v2505_v0  ;;  %v2705_v42 = vmul.f32 %v2358_v33, %v2570_v59  ;;  %v2191_v23 = vmov 0.0  }
  0x8c   : > { %v2098_v29 = vpop.eup %2097  ;;  %v379_v28 = vmul.f32 %v2092_v41, %v363_v38  ;;  %v362_v9 = vsub.f32 2.0, %v346_v18  ;;  %v349_v7 = vmul.f32 %v2096_v30, %v2629_v57  ;;  %1887 = vmatprep.subr.bf16.mxu0 %v2568_v48  ;;  %v2710_v48 = vmul.f32 %v2358_v33, %v2579_v19  ;;  %164 = vst.msk [vmem:[#allocation2] sm:$0xff] %vm163_vm2, %v2191_v23 }
  0x8d   : > { %919 = vmatmul.mubr.f32.gmra.mrb[4].mxu1 %v677_v6  ;;  %v348_v35 = vmul.f32 %v2098_v29, %v2637_v58  ;;  %165 = vst.msk [vmem:[#allocation2 + $0x8] sm:$0xff] %vm163_vm2, %v2191_v23  ;;  %166 = vst.msk [vmem:[#allocation2 + $0x10] sm:$0xff] %vm163_vm2, %v2191_v23 }
  0x8e   : > { %v680_v2 = vmul.f32 %v2358_v33, %v379_v28  ;;  %v378_v49 = vmul.f32 %v2094_v14, %v362_v9  ;;  %v365_v60 = vsub.f32 2.0, %v349_v7  ;;  %167 = vst.msk [vmem:[#allocation2 + $0x18] sm:$0xff] %vm163_vm2, %v2191_v23  ;;  %168 = vst.msk [vmem:[#allocation2 + $0x20] sm:$0xff] %vm163_vm2, %v2191_v23  ;;  %v689_v7 = vmul.f32 %v2355_v32, %v2445_v40 }
  0x8f   : > { %v2100_v25 = vpop.eup %2099  ;;  %v364_v50 = vsub.f32 2.0, %v348_v35  ;;  %169 = vst.msk [vmem:[#allocation2 + $0x28] sm:$0xff] %vm163_vm2, %v2191_v23  ;;  %170 = vst.msk [vmem:[#allocation2 + $0x30] sm:$0xff] %vm163_vm2, %v2191_v23  ;;  %v695_v40 = vmul.f32 %v2355_v32, %v2483_v63  ;;  %v703_v63 = vmul.f32 %v2355_v32, %v2596_v16 }
  0x90   : > { %v2102_v57 = vpop.eup %2101  ;;  %792 = vmatprep.mubr.f32.mxu0 %v680_v2  ;;  %v679_v0 = vmul.f32 %v2355_v32, %v378_v49  ;;  %v381_v58 = vmul.f32 %v2096_v30, %v365_v60  ;;  %923 = vmatprep.mubr.f32.mxu1 %v680_v2  ;;  %v351_v59 = vmul.f32 %v2100_v25, %v2646_v10 }
  0x91   : > { %v2104_v31 = vpop.eup %2103  ;;  %v380_v61 = vmul.f32 %v2098_v29, %v364_v50  ;;  %v350_v56 = vmul.f32 %v2102_v57, %v2648_v15  ;;  %171 = vst.msk [vmem:[#allocation2 + $0x38] sm:$0xff] %vm163_vm2, %v2191_v23  ;;  %172 = vst.msk [vmem:[#allocation2 + $0x40] sm:$0xff] %vm163_vm2, %v2191_v23 }
  0x92   : > { %173 = vst.msk [vmem:[#allocation2 + $0x48] sm:$0xff] %vm163_vm2, %v2191_v23  ;;  %174 = vst.msk [vmem:[#allocation2 + $0x50] sm:$0xff] %vm163_vm2, %v2191_v23  ;;  %793 = vmatmul.mubr.f32.gmra.mrb[6].mxu0 %v679_v0  ;;  %v682_v19 = vmul.f32 %v2358_v33, %v381_v58  ;;  %924 = vmatmul.mubr.f32.gmra.mrb[6].mxu1 %v679_v0  ;;  %v367_v10 = vsub.f32 2.0, %v351_v59  ;;  %v353_v15 = vmul.f32 %v2104_v31, %v2656_v34 }
  0x93   : > { %175 = vst.msk [vmem:[#allocation2 + $0x58] sm:$0xff] %vm163_vm2, %v2191_v23  ;;  %176 = vst.msk [vmem:[#allocation2 + $0x60] sm:$0xff] %vm163_vm2, %v2191_v23  ;;  %v2106_v26 = vpop.eup %2105  ;;  %v681_v36 = vmul.f32 %v2355_v32, %v380_v61  ;;  %1889 = vmatpush1.bf16.xpose.msra.mxu0 %v2577_v55  ;;  %v366_v45 = vsub.f32 2.0, %v350_v56  ;;  %v705_v16 = vld [vmem:[#allocation2] sm:$0xff] }
  0x94   : > { %177 = vst.msk [vmem:[#allocation2 + $0x68] sm:$0xff] %vm163_vm2, %v2191_v23  ;;  %178 = vst.msk [vmem:[#allocation2 + $0x70] sm:$0xff] %vm163_vm2, %v2191_v23  ;;  %v2108_v53 = vpop.eup %2107  ;;  %797 = vmatprep.mubr.f32.mxu0 %v682_v19  ;;  %v383_v17 = vmul.f32 %v2100_v25, %v367_v10  ;;  %928 = vmatprep.mubr.f32.mxu1 %v682_v19  ;;  %v369_v4 = vsub.f32 2.0, %v353_v15  ;;  %v352_v21 = vmul.f32 %v2106_v26, %v2663_v20 }
  0x95   : > { %179 = vst.msk [vmem:[#allocation2 + $0x78] sm:$0xff] %vm163_vm2, %v2191_v23  ;;  %180 = vst.msk [vmem:[#allocation2 + $0x80] sm:$0xff] %vm163_vm2, %v2191_v23  ;;  %v2110_v41 = vpop.eup %2109  ;;  %v382_v37 = vmul.f32 %v2102_v57, %v366_v45  ;;  %1891 = vmatprep.subr.bf16.mxu0 %v2608_v44  ;;  %v355_v6 = vmul.f32 %v2108_v53, %v2671_v46  ;;  %v707_v57 = vld [vmem:[#allocation2 + $0x10] sm:$0xff] }
  0x96   : > { %181 = vst.msk [vmem:[#allocation2 + $0x88] sm:$0xff] %vm163_vm2, %v2191_v23  ;;  %182 = vst.msk [vmem:[#allocation2 + $0x90] sm:$0xff] %vm163_vm2, %v2191_v23  ;;  %798 = vmatmul.mubr.f32.gmra.mrb[8].mxu0 %v681_v36  ;;  %v684_v34 = vmul.f32 %v2358_v33, %v383_v17  ;;  %929 = vmatmul.mubr.f32.gmra.mrb[8].mxu1 %v681_v36  ;;  %v385_v62 = vmul.f32 %v2104_v31, %v369_v4  ;;  %v368_v55 = vsub.f32 2.0, %v352_v21 }
  0x97   : > { %183 = vst.msk [vmem:[#allocation2 + $0x98] sm:$0xff] %vm163_vm2, %v2191_v23  ;;  %184 = vst.msk [vmem:[#allocation2 + $0xa0] sm:$0xff] %vm163_vm2, %v2191_v23  ;;  %v354_v14 = vmul.f32 %v2110_v41, %v2678_v12  ;;  %v683_v38 = vmul.f32 %v2355_v32, %v382_v37  ;;  %v371_v18 = vsub.f32 2.0, %v355_v6 }
  0x98   : > { %185 = vst.msk [vmem:[#allocation2 + $0xa8] sm:$0xff] %vm163_vm2, %v2191_v23  ;;  %186 = vst.msk [vmem:[#allocation2 + $0xb0] sm:$0xff] %vm163_vm2, %v2191_v23  ;;  %802 = vmatprep.mubr.f32.mxu0 %v684_v34  ;;  %v686_v20 = vmul.f32 %v2358_v33, %v385_v62  ;;  %933 = vmatprep.mubr.f32.mxu1 %v684_v34  ;;  %v384_v30 = vmul.f32 %v2106_v26, %v368_v55  ;;  %v836_v35 = vld [vmem:[#allocation2 + $0x40] sm:$0xff] }
  0x99   : > { %187 = vst.msk [vmem:[#allocation2 + $0xb8] sm:$0xff] %vm163_vm2, %v2191_v23  ;;  %v370_v29 = vsub.f32 2.0, %v354_v14  ;;  %v387_v44 = vmul.f32 %v2108_v53, %v371_v18  ;;  %v838_v10 = vld [vmem:[#allocation2 + $0x50] sm:$0xff]  ;;  %v708_v53 = vld [vmem:[#allocation2 + $0x18] sm:$0xff] }
  0x9a   : > { %803 = vmatmul.mubr.f32.gmra.mrb[10].mxu0 %v683_v38  ;;  %v685_v46 = vmul.f32 %v2355_v32, %v384_v30  ;;  %934 = vmatmul.mubr.f32.gmra.mrb[10].mxu1 %v683_v38  ;;  %v839_v17 = vld [vmem:[#allocation2 + $0x58] sm:$0xff]  ;;  %v709_v38 = vld [vmem:[#allocation2 + $0x20] sm:$0xff] }
  0x9b   : > { %v386_v28 = vmul.f32 %v2110_v41, %v370_v29  ;;  %807 = vmatprep.mubr.f32.mxu0 %v686_v20  ;;  %1893 = vmatpush1.bf16.xpose.msra.mxu0 %v2617_v52  ;;  %v688_v12 = vmul.f32 %v2358_v33, %v387_v44  ;;  %v691_v52 = vmul.f32 %v2355_v32, %v2451_v54 }
  0x9c   : > { %938 = vmatprep.mubr.f32.mxu1 %v686_v20  ;;  %v693_v33 = vmul.f32 %v2355_v32, %v2476_v24  ;;  %v699_v54 = vmul.f32 %v2355_v32, %v2526_v11  ;;  %v701_v24 = vmul.f32 %v2355_v32, %v2589_v47  ;;  %v840_v20 = vld [vmem:[#allocation2 + $0x60] sm:$0xff] }
  0x9d   : > { %v687_v9 = vmul.f32 %v2355_v32, %v386_v28 }
  0x9e   : > { %808 = vmatmul.mubr.f32.gmra.mrb[12].mxu0 %v685_v46  ;;  %939 = vmatmul.mubr.f32.gmra.mrb[12].mxu1 %v685_v46 }
  0x9f   : > { %812 = vmatprep.mubr.f32.mxu0 %v688_v12  ;;  %943 = vmatprep.mubr.f32.mxu1 %v688_v12 }
  0xa2   : > { %813 = vmatmul.mubr.f32.gmra.mrb[14].mxu0 %v687_v9  ;;  %944 = vmatmul.mubr.f32.gmra.mrb[14].mxu1 %v687_v9  ;;  %v710_v9 = vld [vmem:[#allocation2 + $0x28] sm:$0xff] }
  0xa3   : > { %1038 = vmatprep.mubr.f32.mxu0 %v2667_v27  ;;  %v697_v27 = vmul.f32 %v2355_v32, %v2520_v3  ;;  %v3091_v3 = vlaneseq }
  0xa6   : > { %1039 = vmatmul.mubr.f32.vlgmr.msra.gmra.mrb[16].mxu0 %v689_v7  ;;  %v841_v7 = vld [vmem:[#allocation2 + $0x68] sm:$0xff] }
  0xa7   : > { %1043 = vmatprep.mubr.f32.mxu0 %v2675_v13  ;;  %v2803_v13 = vand.u32 127, %v3091_v3 }
  0xa9   : > { %v1124_v11 = vadd.s32 %v2803_v13, %v2264_v1  ;;  %v2814_v32 = vadd.s32 %v2803_v13, %v2270_v5  ;;  %v2192_v1 = vmov 1.0|1.0  }
  0xaa   : > { %1044 = vmatmul.mubr.f32.gmra.mrb[18].mxu0 %v691_v52 }
  0xab   : > { %1048 = vmatprep.mubr.f32.mxu0 %v2682_v39  ;;  %vm1132_vm3 = vcmp.eq.s32.totalorder %v1124_v11, 63  ;;  %vm1133_vm4 = vcmp.eq.s32.totalorder %v2814_v32, 63 }
  0xac   : > { %v2808_v39 = vsel %vm1132_vm3, 1.0, %v2191_v23  ;;  %vm2819_vm5 = vmpackc.low %vm1133_vm4, %vm1132_vm3 }
  0xad   : > { %1778 = vmatprep.mubr.msk.f32.mxu1 %vm163_vm2, %v2808_v39  ;;  %1927 = vmatprep.subr.msk.bf16.mxu0 %vm2819_vm5, %v2192_v1 }
  0xae   : > { %1049 = vmatmul.mubr.f32.gmra.mrb[20].mxu0 %v693_v33 }
  0xaf   : > { %1053 = vmatprep.mubr.f32.mxu0 %v2690_v43  ;;  %1929 = vmatpush3.bf16.msk.msra.mxu0 %vm2819_vm5, %v2192_v1 }
  0xb2   : > { %1054 = vmatmul.mubr.f32.gmra.mrb[22].mxu0 %v695_v40 }
  0xb3   : > { %1058 = vmatprep.mubr.f32.mxu0 %v2694_v22 }
  0xb6   : > { %1059 = vmatmul.mubr.f32.gmra.mrb[24].mxu0 %v697_v27 }
  0xb7   : > { %1063 = vmatprep.mubr.f32.mxu0 %v2701_v51  ;;  %v706_v51 = vld [vmem:[#allocation2 + $0x8] sm:$0xff] }
  0xba   : > { %1064 = vmatmul.mubr.f32.gmra.mrb[26].mxu0 %v699_v54 }
  0xbb   : > { %1068 = vmatprep.mubr.f32.mxu0 %v2705_v42 }
  0xbe   : > { %1069 = vmatmul.mubr.f32.gmra.mrb[28].mxu0 %v701_v24  ;;  %v711_v24 = vld [vmem:[#allocation2 + $0x30] sm:$0xff] }
  0xbf   : > { %1073 = vmatprep.mubr.f32.mxu0 %v2710_v48  ;;  %v837_v48 = vld [vmem:[#allocation2 + $0x48] sm:$0xff] }
  0xc2   : > { %1074 = vmatmul.mubr.f32.gmra.mrb[30].mxu0 %v703_v63 }
 0x154   : > { %v779_v5 = vpop.f32.mrb[0].mxu0 }
 0x155   : > { %v818_v43 = vadd.f32 %v779_v5, %v705_v16  ;;  %v781_v22 = vpop.f32.mrb[1].mxu0  ;;  %v842_v16 = vld [vmem:[#allocation2 + $0x70] sm:$0xff] }
 0x157   : > { %827 = vst.msk [vmem:[#allocation2] sm:$0xff] %vm163_vm2, %v818_v43 }
 0x158   : > { %v910_v42 = vpop.f32.mrb[0].mxu1 }
 0x159   : > { %v784_v2 = vpop.f32.mrb[2].mxu0  ;;  %v949_v49 = vadd.f32 %v910_v42, %v836_v35  ;;  %v912_v60 = vpop.f32.mrb[1].mxu1 }
 0x15a   : > { %v819_v25 = vadd.f32 %v784_v2, %v706_v51  ;;  %v786_v50 = vpop.f32.mrb[3].mxu0 }
 0x15b   : > { %957 = vst.msk [vmem:[#allocation2 + $0x40] sm:$0xff] %vm163_vm2, %v949_v49  ;;  %v843_v50 = vld [vmem:[#allocation2 + $0x78] sm:$0xff] }
 0x15c   : > { %828 = vst.msk [vmem:[#allocation2 + $0x8] sm:$0xff] %vm163_vm2, %v819_v25  ;;  %v915_v0 = vpop.f32.mrb[2].mxu1  ;;  %v712_v25 = vld [vmem:[#allocation2 + $0x38] sm:$0xff] }
 0x15d   : > { %v789_v58 = vpop.f32.mrb[4].mxu0  ;;  %v950_v59 = vadd.f32 %v915_v0, %v837_v48  ;;  %v917_v31 = vpop.f32.mrb[3].mxu1 }
 0x15e   : > { %v1098_v61 = vld [vmem:[#allocation2] sm:$0xff]  ;;  %v820_v56 = vadd.f32 %v789_v58, %v707_v57  ;;  %v791_v19 = vpop.f32.mrb[5].mxu0 }
 0x15f   : > { %1156 = vst.msk [vmem:[%s2835_s27] sm:$0xff] %vm163_vm2, %v1098_v61  ;;  %958 = vst.msk [vmem:[#allocation2 + $0x48] sm:$0xff] %vm163_vm2, %v950_v59  ;;  %v966_v19 = vld [vmem:[#allocation2 + $0x80] sm:$0xff] }
 0x160   : > { %829 = vst.msk [vmem:[#allocation2 + $0x10] sm:$0xff] %vm163_vm2, %v820_v56  ;;  %v920_v15 = vpop.f32.mrb[4].mxu1 }
 0x161   : > { %v951_v26 = vadd.f32 %v920_v15, %v838_v10  ;;  %v922_v36 = vpop.f32.mrb[5].mxu1 }
 0x162   : > { %v1106_v4 = vld [vmem:[#allocation2 + $0x40] sm:$0xff] }
 0x163   : > { %v1099_v45 = vld [vmem:[#allocation2 + $0x8] sm:$0xff]  ;;  %959 = vst.msk [vmem:[#allocation2 + $0x50] sm:$0xff] %vm163_vm2, %v951_v26 }
 0x164   : > { %1157 = vst.msk [vmem:[%s2835_s27 + $0x8] sm:$0xff] %vm163_vm2, %v1099_v45 }
 0x165   : > { %v794_v21 = vpop.f32.mrb[6].mxu0  ;;  %v925_v41 = vpop.f32.mrb[6].mxu1 }
 0x166   : > { %v821_v37 = vadd.f32 %v794_v21, %v708_v53  ;;  %v796_v6 = vpop.f32.mrb[7].mxu0  ;;  %v952_v34 = vadd.f32 %v925_v41, %v839_v17  ;;  %v927_v62 = vpop.f32.mrb[7].mxu1  ;;  %v1107_v55 = vld [vmem:[#allocation2 + $0x48] sm:$0xff]  ;;  %v2867_v41 = vadd.s32 %v2803_v13, %v2273_v8 }
 0x167   : > { %v1100_v14 = vld [vmem:[#allocation2 + $0x10] sm:$0xff]  ;;  %v1894_v18 = vpack.c.bf16 %v1107_v55, %v1106_v4  ;;  %v967_v17 = vld [vmem:[#allocation2 + $0x88] sm:$0xff] }
 0x168   : > { %1158 = vst.msk [vmem:[%s2835_s27 + $0x10] sm:$0xff] %vm163_vm2, %v1100_v14  ;;  %830 = vst.msk [vmem:[#allocation2 + $0x18] sm:$0xff] %vm163_vm2, %v821_v37  ;;  %v968_v62 = vld [vmem:[#allocation2 + $0x90] sm:$0xff]  ;;  %vm1134_vm6 = vcmp.eq.s32.totalorder %v2867_v41, 63 }
 0x169   : > { %960 = vst.msk [vmem:[#allocation2 + $0x58] sm:$0xff] %vm163_vm2, %v952_v34  ;;  %v799_v30 = vpop.f32.mrb[8].mxu0  ;;  %1895 = vmatprep.subr.bf16.mxu1 %v1894_v18  ;;  %v930_v29 = vpop.f32.mrb[8].mxu1 }
 0x16a   : > { %v822_v44 = vadd.f32 %v799_v30, %v709_v38  ;;  %v801_v46 = vpop.f32.mrb[9].mxu0  ;;  %v953_v28 = vadd.f32 %v930_v29, %v840_v20  ;;  %1897 = vmatpush3.bf16.msra.mxu1 %v1894_v18  ;;  %v932_v12 = vpop.f32.mrb[9].mxu1  ;;  %v1108_v40 = vld [vmem:[#allocation2 + $0x50] sm:$0xff]  ;;  %v3094_v38 = vld [vmem:[#allocation6_spill] sm:$0xff]  ;;  %v3095_v30 = vld [vmem:[#allocation7_spill] sm:$0xff] }
 0x16b   : > { %v2874_v18 = vadd.s32 %v2803_v13, %v3094_v38  ;;  %v2879_v8 = vadd.s32 %v2803_v13, %v3095_v30  ;;  %v969_v46 = vld [vmem:[#allocation2 + $0x98] sm:$0xff]  ;;  %v2890_v12 = vsel %vm1134_vm6, 1.0, %v2191_v23 }
 0x16c   : > { %831 = vst.msk [vmem:[#allocation2 + $0x20] sm:$0xff] %vm163_vm2, %v822_v44  ;;  %961 = vst.msk [vmem:[#allocation2 + $0x60] sm:$0xff] %vm163_vm2, %v953_v28  ;;  %v2884_v28 = vsel %vm1133_vm4, 1.0, %v2191_v23 }
 0x16d   : > { %v804_v52 = vpop.f32.mrb[10].mxu0  ;;  %v935_v33 = vpop.f32.mrb[10].mxu1  ;;  %vm1135_vm7 = vcmp.eq.s32.totalorder %v2874_v18, 63  ;;  %vm1136_vm8 = vcmp.eq.s32.totalorder %v2879_v8, 63 }
 0x16e   : > { %v823_v27 = vadd.f32 %v804_v52, %v710_v9  ;;  %v806_v54 = vpop.f32.mrb[11].mxu0  ;;  %v954_v63 = vadd.f32 %v935_v33, %v841_v7  ;;  %v937_v3 = vpop.f32.mrb[11].mxu1  ;;  %v3096_v9 = vld [vmem:[#allocation8_spill] sm:$0xff]  ;;  %v3097_v33 = vld [vmem:[#allocation9_spill] sm:$0xff]  ;;  %vm1930_vm12 = vmpackc.low %vm1135_vm7, %vm1134_vm6 }
 0x16f   : > { %v1101_v11 = vld [vmem:[#allocation2 + $0x18] sm:$0xff]  ;;  %v2895_v7 = vadd.s32 %v2803_v13, %v3096_v9  ;;  %v2900_v32 = vadd.s32 %v2803_v13, %v3097_v33  ;;  %v970_v54 = vld [vmem:[#allocation2 + $0xa0] sm:$0xff]  ;;  %v1657_v3 = vsel %vm1135_vm7, 1.0, %v2191_v23  ;;  %1931 = vmatprep.subr.msk.bf16.mxu0 %vm1930_vm12, %v2192_v1 }
 0x170   : > { %v1109_v5 = vld [vmem:[#allocation2 + $0x58] sm:$0xff]  ;;  %1159 = vst.msk [vmem:[%s2835_s27 + $0x18] sm:$0xff] %vm163_vm2, %v1101_v11  ;;  %832 = vst.msk [vmem:[#allocation2 + $0x28] sm:$0xff] %vm163_vm2, %v823_v27  ;;  %1933 = vmatpush3.bf16.msk.msra.mxu0 %vm1930_vm12, %v2192_v1 }
 0x171   : > { %962 = vst.msk [vmem:[#allocation2 + $0x68] sm:$0xff] %vm163_vm2, %v954_v63  ;;  %v1898_v43 = vpack.c.bf16 %v1109_v5, %v1108_v40  ;;  %v809_v22 = vpop.f32.mrb[12].mxu0  ;;  %v940_v35 = vpop.f32.mrb[12].mxu1  ;;  %vm1137_vm9 = vcmp.eq.s32.totalorder %v2895_v7, 63  ;;  %v3098_v5 = vld [vmem:[#allocation10_spill] sm:$0xff]  ;;  %vm1138_vm10 = vcmp.eq.s32.totalorder %v2900_v32, 63 }
 0x172   : > { %v824_v51 = vadd.f32 %v809_v22, %v711_v24  ;;  %v811_v42 = vpop.f32.mrb[13].mxu0  ;;  %v955_v2 = vadd.f32 %v940_v35, %v842_v16  ;;  %v942_v49 = vpop.f32.mrb[13].mxu1  ;;  %v1658_v16 = vsel %vm1136_vm8, 1.0, %v2191_v23  ;;  %vm1934_vm13 = vmpackc.low %vm1137_vm9, %vm1136_vm8 }
 0x173   : > { %1899 = vmatprep.subr.bf16.mxu1 %v1898_v43  ;;  %v1102_v60 = vld [vmem:[#allocation2 + $0x20] sm:$0xff]  ;;  %v971_v42 = vld [vmem:[#allocation2 + $0xa8] sm:$0xff]  ;;  %1935 = vmatprep.subr.msk.bf16.mxu0 %vm1934_vm13, %v2192_v1 }
 0x174   : > { %1901 = vmatpush3.bf16.msra.mxu1 %v1898_v43  ;;  %1160 = vst.msk [vmem:[%s2835_s27 + $0x20] sm:$0xff] %vm163_vm2, %v1102_v60  ;;  %833 = vst.msk [vmem:[#allocation2 + $0x30] sm:$0xff] %vm163_vm2, %v824_v51  ;;  %v1110_v0 = vld [vmem:[#allocation2 + $0x60] sm:$0xff]  ;;  %v2916_v43 = vadd.s32 %v2803_v13, %v3098_v5  ;;  %v1660_v13 = vsel %vm1138_vm10, 1.0, %v2191_v23  ;;  %1937 = vmatpush3.bf16.msk.msra.mxu0 %vm1934_vm13, %v2192_v1 }
 0x175   : > { %963 = vst.msk [vmem:[#allocation2 + $0x70] sm:$0xff] %vm163_vm2, %v955_v2  ;;  %v814_v48 = vpop.f32.mrb[14].mxu0  ;;  %v945_v57 = vpop.f32.mrb[14].mxu1  ;;  %v1659_v2 = vsel %vm1137_vm9, 1.0, %v2191_v23 }
 0x176   : > { %v825_v58 = vadd.f32 %v814_v48, %v712_v25  ;;  %v816_v59 = vpop.f32.mrb[15].mxu0  ;;  %v956_v31 = vadd.f32 %v945_v57, %v843_v50  ;;  %v947_v61 = vpop.f32.mrb[15].mxu1  ;;  %vm1139_vm11 = vcmp.eq.s32.totalorder %v2916_v43, 63  ;;  %v972_v50 = vld [vmem:[#allocation2 + $0xb0] sm:$0xff] }
 0x177   : > { %v1103_v56 = vld [vmem:[#allocation2 + $0x28] sm:$0xff]  ;;  %vm1938_vm14 = vmpackc.low %vm1139_vm11, %vm1138_vm10 }
 0x178   : > { %v1111_v10 = vld [vmem:[#allocation2 + $0x68] sm:$0xff]  ;;  %1161 = vst.msk [vmem:[%s2835_s27 + $0x28] sm:$0xff] %vm163_vm2, %v1103_v56  ;;  %834 = vst.msk [vmem:[#allocation2 + $0x38] sm:$0xff] %vm163_vm2, %v825_v58  ;;  %v973_v56 = vld [vmem:[#allocation2 + $0xb8] sm:$0xff]  ;;  %1939 = vmatprep.subr.msk.bf16.mxu0 %vm1938_vm14, %v2192_v1 }
 0x179   : > { %964 = vst.msk [vmem:[#allocation2 + $0x78] sm:$0xff] %vm163_vm2, %v956_v31  ;;  %v1902_v15 = vpack.c.bf16 %v1111_v10, %v1110_v0  ;;  %v1040_v26 = vpop.f32.mrb[16].mxu0  ;;  %v1661_v0 = vsel %vm1139_vm11, 1.0, %v2191_v23  ;;  %1941 = vmatpush3.bf16.msk.msra.mxu0 %vm1938_vm14, %v2192_v1 }
 0x17a   : > { %v1079_v36 = vadd.f32 %v1040_v26, %v966_v19  ;;  %v1042_v45 = vpop.f32.mrb[17].mxu0 }
 0x17b   : > { %1903 = vmatprep.subr.bf16.mxu1 %v1902_v15  ;;  %v1104_v53 = vld [vmem:[#allocation2 + $0x30] sm:$0xff] }
 0x17c   : > { %1905 = vmatpush3.bf16.msra.mxu1 %v1902_v15  ;;  %1162 = vst.msk [vmem:[%s2835_s27 + $0x30] sm:$0xff] %vm163_vm2, %v1104_v53  ;;  %1087 = vst.msk [vmem:[#allocation2 + $0x80] sm:$0xff] %vm163_vm2, %v1079_v36  ;;  %v1112_v21 = vld [vmem:[#allocation2 + $0x70] sm:$0xff] }
 0x17d   : > { %v1045_v4 = vpop.f32.mrb[18].mxu0 }
 0x17e   : > { %v1080_v37 = vadd.f32 %v1045_v4, %v967_v17  ;;  %v1047_v6 = vpop.f32.mrb[19].mxu0 }
 0x17f   : > { %v1105_v34 = vld [vmem:[#allocation2 + $0x38] sm:$0xff] }
 0x180   : > { %v1113_v55 = vld [vmem:[#allocation2 + $0x78] sm:$0xff]  ;;  %1163 = vst.msk [vmem:[%s2835_s27 + $0x38] sm:$0xff] %vm163_vm2, %v1105_v34  ;;  %1088 = vst.msk [vmem:[#allocation2 + $0x88] sm:$0xff] %vm163_vm2, %v1080_v37 }
 0x181   : > { %v1906_v14 = vpack.c.bf16 %v1113_v55, %v1112_v21  ;;  %v1050_v20 = vpop.f32.mrb[20].mxu0 }
 0x182   : > { %v1081_v29 = vadd.f32 %v1050_v20, %v968_v62  ;;  %v1052_v44 = vpop.f32.mrb[21].mxu0 }
 0x183   : > { %1907 = vmatprep.subr.bf16.mxu1 %v1906_v14  ;;  %v1114_v24 = vld [vmem:[#allocation2 + $0x80] sm:$0xff] }
 0x184   : > { %1909 = vmatpush3.bf16.msra.mxu1 %v1906_v14  ;;  %1089 = vst.msk [vmem:[#allocation2 + $0x90] sm:$0xff] %vm163_vm2, %v1081_v29 }
 0x185   : > { %v1055_v52 = vpop.f32.mrb[22].mxu0 }
 0x186   : > { %v1082_v40 = vadd.f32 %v1055_v52, %v969_v46  ;;  %v1057_v27 = vpop.f32.mrb[23].mxu0 }
 0x187   : > { %1779 = vmatmul.mubr.msk.f32.vlgmr.msra.gmra.mrb[16].mxu1 %vm163_vm2, %v2884_v28  ;;  %v1115_v63 = vld [vmem:[#allocation2 + $0x88] sm:$0xff] }
 0x188   : > { %1781 = vmatprep.mubr.msk.f32.mxu1 %vm163_vm2, %v2890_v12  ;;  %1090 = vst.msk [vmem:[#allocation2 + $0x98] sm:$0xff] %vm163_vm2, %v1082_v40  ;;  %v1910_v11 = vpack.c.bf16 %v1115_v63, %v1114_v24 }
 0x189   : > { %v1060_v22 = vpop.f32.mrb[24].mxu0 }
 0x18a   : > { %v1083_v35 = vadd.f32 %v1060_v22, %v970_v54  ;;  %v1062_v51 = vpop.f32.mrb[25].mxu0  ;;  %1911 = vmatprep.subr.bf16.mxu1 %v1910_v11 }
 0x18b   : > { %1782 = vmatmul.mubr.msk.f32.gmra.mrb[18].mxu1 %vm163_vm2, %v1657_v3  ;;  %v1116_v48 = vld [vmem:[#allocation2 + $0x90] sm:$0xff] }
 0x18c   : > { %1913 = vmatpush3.bf16.msra.mxu1 %v1910_v11  ;;  %1784 = vmatprep.mubr.msk.f32.mxu1 %vm163_vm2, %v1658_v16  ;;  %1091 = vst.msk [vmem:[#allocation2 + $0xa0] sm:$0xff] %vm163_vm2, %v1083_v35 }
 0x18d   : > { %v1065_v49 = vpop.f32.mrb[26].mxu0 }
 0x18e   : > { %v1084_v60 = vadd.f32 %v1065_v49, %v971_v42  ;;  %v1067_v25 = vpop.f32.mrb[27].mxu0 }
 0x18f   : > { %1785 = vmatmul.mubr.msk.f32.gmra.mrb[20].mxu1 %vm163_vm2, %v1659_v2  ;;  %v1117_v57 = vld [vmem:[#allocation2 + $0x98] sm:$0xff] }
 0x190   : > { %1787 = vmatprep.mubr.msk.f32.mxu1 %vm163_vm2, %v1660_v13  ;;  %1092 = vst.msk [vmem:[#allocation2 + $0xa8] sm:$0xff] %vm163_vm2, %v1084_v60  ;;  %v1914_v58 = vpack.c.bf16 %v1117_v57, %v1116_v48 }
 0x191   : > { %v1070_v59 = vpop.f32.mrb[28].mxu0 }
 0x192   : > { %v1085_v31 = vadd.f32 %v1070_v59, %v972_v50  ;;  %v1072_v61 = vpop.f32.mrb[29].mxu0  ;;  %1915 = vmatprep.subr.bf16.mxu1 %v1914_v58 }
 0x193   : > { %1788 = vmatmul.mubr.msk.f32.gmra.mrb[22].mxu1 %vm163_vm2, %v1661_v0  ;;  %v1118_v23 = vld [vmem:[#allocation2 + $0xa0] sm:$0xff] }
 0x194   : > { %1917 = vmatpush3.bf16.msra.mxu1 %v1914_v58  ;;  %1806 = vmatprep.mubr.msk.f32.mxu1 %vm163_vm2, %v2808_v39  ;;  %1093 = vst.msk [vmem:[#allocation2 + $0xb0] sm:$0xff] %vm163_vm2, %v1085_v31 }
 0x195   : > { %v1075_v19 = vpop.f32.mrb[30].mxu0 }
 0x196   : > { %v1086_v10 = vadd.f32 %v1075_v19, %v973_v56  ;;  %v1077_v15 = vpop.f32.mrb[31].mxu0 }
 0x197   : > { %v1119_v26 = vld [vmem:[#allocation2 + $0xa8] sm:$0xff] }
 0x198   : > { %1094 = vst.msk [vmem:[#allocation2 + $0xb8] sm:$0xff] %vm163_vm2, %v1086_v10  ;;  %v1918_v36 = vpack.c.bf16 %v1119_v26, %v1118_v23 }
 0x19a   : > { %1919 = vmatprep.subr.bf16.mxu1 %v1918_v36 }
 0x19b   : > { %1921 = vmatpush3.bf16.msra.mxu1 %v1918_v36  ;;  %v1120_v45 = vld [vmem:[#allocation2 + $0xb0] sm:$0xff] }
 0x19f   : > { %v1121_v53 = vld [vmem:[#allocation2 + $0xb8] sm:$0xff] }
 0x1a0   : > { %v1922_v17 = vpack.c.bf16 %v1121_v53, %v1120_v45 }
 0x1a2   : > { %1923 = vmatprep.subr.bf16.mxu1 %v1922_v17 }
 0x1a3   : > { %1925 = vmatpush3.bf16.msra.mxu1 %v1922_v17 }
 0x1a4   : > { %1942 = vmatprep.subr.msk.bf16.mxu1 %vm2819_vm5, %v2192_v1 }
 0x1a6   : > { %1807 = vmatmul.mubr.msk.f32.vlgmr.msra.gmra.mrb[24].mxu1 %vm163_vm2, %v2884_v28 }
 0x1a7   : > { %1809 = vmatprep.mubr.msk.f32.mxu1 %vm163_vm2, %v2890_v12  ;;  %1946 = vmatpush3.bf16.msk.msra.mxu1 %vm2819_vm5, %v2192_v1 }
 0x1a8   : > { %1943 = vmatprep.subr.msk.bf16.mxu1 %vm1930_vm12, %v2192_v1 }
 0x1aa   : > { %1810 = vmatmul.mubr.msk.f32.gmra.mrb[26].mxu1 %vm163_vm2, %v1657_v3 }
 0x1ab   : > { %1812 = vmatprep.mubr.msk.f32.mxu1 %vm163_vm2, %v1658_v16  ;;  %1947 = vmatpush3.bf16.msk.msra.mxu1 %vm1930_vm12, %v2192_v1 }
 0x1ac   : > { %1944 = vmatprep.subr.msk.bf16.mxu1 %vm1934_vm13, %v2192_v1 }
 0x1ae   : > { %1813 = vmatmul.mubr.msk.f32.gmra.mrb[28].mxu1 %vm163_vm2, %v1659_v2 }
 0x1af   : > { %1815 = vmatprep.mubr.msk.f32.mxu1 %vm163_vm2, %v1660_v13  ;;  %1948 = vmatpush3.bf16.msk.msra.mxu1 %vm1934_vm13, %v2192_v1 }
 0x1b0   : > { %1945 = vmatprep.subr.msk.bf16.mxu1 %vm1938_vm14, %v2192_v1 }
 0x1b2   : > { %1816 = vmatmul.mubr.msk.f32.gmra.mrb[30].mxu1 %vm163_vm2, %v1661_v0 }
 0x1b3   : > { %1949 = vmatpush3.bf16.msk.msra.mxu1 %vm1938_vm14, %v2192_v1 }
 0x25a   : > { %v1780_v39 = vpop.f32.mrb[16].mxu1 }
 0x25b   : > { %1671 = vst.msk [vmem:[%s2835_s27 + $0x48] sm:$0xff] %vm163_vm2, %v1780_v39  ;;  %v1254_v47 = vpop.f32.mrb[17].mxu1 }
 0x25c   : > { %1670 = vst.msk [vmem:[%s2835_s27 + $0x40] sm:$0xff] %vm163_vm2, %v1254_v47 }
 0x25e   : > { %v1783_v4 = vpop.f32.mrb[18].mxu1 }
 0x25f   : > { %1673 = vst.msk [vmem:[%s2835_s27 + $0x58] sm:$0xff] %vm163_vm2, %v1783_v4  ;;  %v1264_v21 = vpop.f32.mrb[19].mxu1 }
 0x260   : > { %1672 = vst.msk [vmem:[%s2835_s27 + $0x50] sm:$0xff] %vm163_vm2, %v1264_v21 }
 0x262   : > { %v1786_v41 = vpop.f32.mrb[20].mxu1 }
 0x263   : > { %1675 = vst.msk [vmem:[%s2835_s27 + $0x68] sm:$0xff] %vm163_vm2, %v1786_v41  ;;  %v1274_v37 = vpop.f32.mrb[21].mxu1 }
 0x264   : > { %1674 = vst.msk [vmem:[%s2835_s27 + $0x60] sm:$0xff] %vm163_vm2, %v1274_v37 }
 0x266   : > { %v1789_v1 = vpop.f32.mrb[22].mxu1 }
 0x267   : > { %1677 = vst.msk [vmem:[%s2835_s27 + $0x78] sm:$0xff] %vm163_vm2, %v1789_v1  ;;  %v1284_v6 = vpop.f32.mrb[23].mxu1 }
 0x268   : > { %1676 = vst.msk [vmem:[%s2835_s27 + $0x70] sm:$0xff] %vm163_vm2, %v1284_v6 }
 0x279   : > { %v1808_v34 = vpop.f32.mrb[24].mxu1 }
 0x27a   : > { %v1368_v62 = vpop.f32.mrb[25].mxu1 }
 0x27b   : > { %1834 = vmatprep.mubr.msk.f32.mxu0 %vm163_vm2, %v1368_v62 }
 0x27c   : > { %1835 = vmatmul.mubr.msk.f32.vlgmr.msra.gmra.mrb[32].mxu0 %vm163_vm2, %v1808_v34 }
 0x27d   : > { %v1811_v55 = vpop.f32.mrb[26].mxu1 }
 0x27e   : > { %v1378_v14 = vpop.f32.mrb[27].mxu1 }
 0x27f   : > { %1837 = vmatprep.mubr.msk.f32.mxu0 %vm163_vm2, %v1378_v14 }
 0x280   : > { %1838 = vmatmul.mubr.msk.f32.gmra.mrb[34].mxu0 %vm163_vm2, %v1811_v55 }
 0x281   : > { %v1814_v38 = vpop.f32.mrb[28].mxu1 }
 0x282   : > { %v1388_v18 = vpop.f32.mrb[29].mxu1 }
 0x283   : > { %1840 = vmatprep.mubr.msk.f32.mxu1 %vm163_vm2, %v1388_v18 }
 0x284   : > { %1841 = vmatmul.mubr.msk.f32.vlgmr.msra.gmra.mrb[32].mxu1 %vm163_vm2, %v1814_v38 }
 0x285   : > { %v1817_v20 = vpop.f32.mrb[30].mxu1 }
 0x286   : > { %v1398_v30 = vpop.f32.mrb[31].mxu1 }
 0x287   : > { %1843 = vmatprep.mubr.msk.f32.mxu1 %vm163_vm2, %v1398_v30 }
 0x288   : > { %1844 = vmatmul.mubr.msk.f32.gmra.mrb[34].mxu1 %vm163_vm2, %v1817_v20 }
 0x34f   : > { %v1836_v8 = vpop.f32.mrb[32].mxu0 }
 0x350   : > { %1703 = vst.msk [vmem:[%s2835_s27 + $0x88] sm:$0xff] %vm163_vm2, %v1836_v8  ;;  %v1497_v29 = vpop.f32.mrb[33].mxu0 }
 0x351   : > { %1702 = vst.msk [vmem:[%s2835_s27 + $0x80] sm:$0xff] %vm163_vm2, %v1497_v29 }
 0x353   : > { %v1839_v44 = vpop.f32.mrb[34].mxu0 }
 0x354   : > { %1705 = vst.msk [vmem:[%s2835_s27 + $0x98] sm:$0xff] %vm163_vm2, %v1839_v44  ;;  %v1507_v46 = vpop.f32.mrb[35].mxu0 }
 0x355   : > { %1704 = vst.msk [vmem:[%s2835_s27 + $0x90] sm:$0xff] %vm163_vm2, %v1507_v46 }
 0x357   : > { %v1842_v28 = vpop.f32.mrb[32].mxu1 }
 0x358   : > { %1707 = vst.msk [vmem:[%s2835_s27 + $0xa8] sm:$0xff] %vm163_vm2, %v1842_v28  ;;  %v1517_v12 = vpop.f32.mrb[33].mxu1 }
 0x359   : > { %1706 = vst.msk [vmem:[%s2835_s27 + $0xa0] sm:$0xff] %vm163_vm2, %v1517_v12 }
 0x35b   : > { %v1845_v9 = vpop.f32.mrb[34].mxu1 }
 0x35c   : > { %1709 = vst.msk [vmem:[%s2835_s27 + $0xb8] sm:$0xff] %vm163_vm2, %v1845_v9  ;;  %v1527_v7 = vpop.f32.mrb[35].mxu1 }
 0x35d   : > { %1708 = vst.msk [vmem:[%s2835_s27 + $0xb0] sm:$0xff] %vm163_vm2, %v1527_v7 }
 0x35e   : > { %2124 = shalt.err (!%p2121_p5)
}
 0x35f   : > { %s2125_s15 = scalar_lea.hbm %s3020_s3, 3072  ;;  %s2129_s21 = scalar_lea.hbm %s3077_s1, 6144 }
 0x360   : > { %p2126_p6 = scmp.ne.s32.totalorder %s3020_s3, %s2125_s15  ;;  %p2130_p10 = scmp.lt.u32.totalorder %s3020_s3, %s3077_s1 }
 0x361   : > { %p2131_p11 = scmp.lt.u32.totalorder %s2129_s21, %s2125_s15  ;;  %p2133_p13 = scmp.lt.u32.totalorder %s2125_s15, %s3020_s3 }
 0x362   : > { %p2127_p7 = pnand %p2126_p6, %p2246_p4 }
 0x363   : > { %p2132_p12 = por %p2131_p11, %p2130_p10 }
 0x364   : > { %p2128_p9 = pneg %p2127_p7 }
 0x365   : > { %p2134_p0 = por %p2133_p13, %p2132_p12 }
 0x367   : > { %p2135_p1 = pnand %p2134_p0, %p2128_p9 }
 0x369   : > { %2138 = shalt.err (!%p2135_p1)
}
 0x36a   : > { %s2194_s24 = smov 128   ;;  %s2195_s25 = smov 8  }
 0x36b   : > { %1952 = dma.vmem_to_hbm [thread:$0]  (%p2246_p4), %s3022_s29, 3072, %s3020_s3, %s3030_s4, %s2194_s24, %s2194_s24, %s2195_s25  }
 0x36c PF: > { %p1958_p2 = scmp.ge.s32.totalorder %s2189_s11, 2  ;;  %s1576_s26 = sand.u32 1, %s2169_s6  }
 0x36d   : > { %s1577_s27 = scalar_lea.sflag [#allocation4], %s1576_s26 }
 0x36e   : > { %p1955_p3 = pnand %p1958_p2, %p2253_p8 }
 0x370   : > { %2164 = dma.done.wait (!%p1955_p3), %s1577_s27, 3072  }
 0x371   : > { %2166 = vsyncadd (!%p1955_p3), %s1577_s27, 4294964224  ;;  %s14_s11 = sadd.s32 1, %s2189_s11   ;;  %s3099_s6 = smov %s2173_s7 }
 0x372   : > { %p11_p5 = scmp.ge.s32.totalorder %s14_s11, 4   ;;  %s3100_s7 = smov %s2177_s8 }
 0x373   : > { %s3101_s8 = smov %s2259_s19  ;;  %s3102_s9 = smov %s2185_s10 }
 0x374   : > { %s3103_s10 = smov %s3105_s14  ;;  %13 = sbr.rel (!%p11_p5) target bundleno = 4 (0x4), region = 71 }
 0x37b   :  { %1582 = vsyncpa [#allocation4], 1 }
 0x37c   :  { %1584 = vsyncpa [#allocation4 + $0x1], 1 }

</bundles_post_ra>
